<compile_context>
chip_gen: v7x
topology: tpu7x:2x2x1
jax: 0.10.0
libtpu: 0.0.40
codegen_flags: <defaults>
</compile_context>

<pallas_src>
import functools
import numpy as np

import jax
import jax.numpy as jnp
from jax.experimental import pallas as pl
from jax.experimental.pallas import tpu as pltpu


# JayParks' custom LayerNormalization uses eps=1e-6 (not nn.LayerNorm's 1e-5).
LN_EPS = 1e-6


# ----------------------------------------------------------------------------
# Kernel: one (batch-element, layer) step of the decoder stack
# ----------------------------------------------------------------------------
def _decoder_layer_kernel(x_ref, enc_ref, dtok_ref, etok_ref, *rest,
                          n_layers, n_heads, d_k, d_v, mxu_dtype):
    w = rest[:22]
    o_ref = rest[22]
    x_sc = rest[23]          # (Lq, D) f32 activation carry across the layer axis
    (sa_wq, sa_bq, sa_wkv, sa_bkv, sa_wo, sa_bo, sa_g, sa_beta,
     ca_wq, ca_bq, ca_wkv, ca_bkv, ca_wo, ca_bo, ca_g, ca_beta,
     f_w1, f_b1, f_w2, f_b2, f_g, f_beta) = w

    li = pl.program_id(1)
    H = n_heads
    Lq, D = x_sc.shape
    scale = 1.0 / float(np.sqrt(d_k))

    # layer 0: pull this batch element's embedded activations into the carry
    @pl.when(li == 0)
    def _():
        x_sc[...] = x_ref[...]

    x = x_sc[...]            # (Lq, D)  f32
    enc = enc_ref[...]       # (Lkv, D) f32

    # ---- masks built on the fly (cheap VPU compares, no f32 mask DMA) -------
    dec_pad = dtok_ref[...] == -1                                    # (1, Lq)
    causal = (jax.lax.broadcasted_iota(jnp.int32, (Lq, Lq), 1) >
              jax.lax.broadcasted_iota(jnp.int32, (Lq, Lq), 0))      # key > query
    self_mask = (causal | dec_pad)[None]                             # (1, Lq, Lq)
    enc_mask = (etok_ref[...] == -1)[None]                           # (1, 1, Lkv)

    def layernorm(y, g, beta):                                       # f32 math
        mu = jnp.mean(y, axis=-1, keepdims=True)
        var = jnp.mean(jnp.square(y - mu), axis=-1, keepdims=True)
        return (y - mu) * jax.lax.rsqrt(var + LN_EPS) * g[...] + beta[...]

    def split_heads(t, hd):   # (L, H*hd) -> (H, L, hd) via static lane slices
        return jnp.stack([t[:, h * hd:(h + 1) * hd] for h in range(H)], axis=0)

    def mha(xq, kv, mask, wq, bq, wkv, bkv, wo, bo, g, beta):
        lq = xq.shape[0]
        # single lane-dense Q projection; 1/sqrt(d_k) folded into q once
        # (equivalent to scaling the scores — intentionally also scales bq)
        q = (jnp.dot(xq.astype(mxu_dtype), wq[...],
                     preferred_element_type=jnp.float32) + bq[...]) * scale
        # fused K||V projection: one matmul against concat(Wk, Wv)
        kvp = jnp.dot(kv.astype(mxu_dtype), wkv[...],
                      preferred_element_type=jnp.float32) + bkv[...]
        k = kvp[:, :H * d_k]
        v = kvp[:, H * d_k:]
        # heads only for the score block (head-batched einsums, leading batch)
        qh = split_heads(q, d_k)                                     # (H, lq, dk)
        kh = split_heads(k, d_k)
        vh = split_heads(v, d_v)
        s = jnp.einsum('hqd,hkd->hqk', qh.astype(mxu_dtype), kh.astype(mxu_dtype),
                       preferred_element_type=jnp.float32)           # (H, lq, lk)
        s = jnp.where(mask, -1e9, s)
        s = s - jnp.max(s, axis=-1, keepdims=True)
        e = jnp.exp(s)
        # approx reciprocal runs on the EUP slot; ~1e-4 rel. error vs exact div
        p = e * pl.reciprocal(jnp.sum(e, axis=-1, keepdims=True), approx=True)
        ctx = jnp.einsum('hqk,hkv->hqv', p.astype(mxu_dtype), vh.astype(mxu_dtype),
                         preferred_element_type=jnp.float32)         # (H, lq, dv)
        # concat heads along the lane axis, then ONE output projection
        ctx2 = jnp.concatenate([ctx[h] for h in range(H)], axis=-1)  # (lq, H*dv)
        out = jnp.dot(ctx2.astype(mxu_dtype), wo[...],
                      preferred_element_type=jnp.float32) + bo[...]
        return layernorm(out + xq, g, beta)      # residual + post-LN (f32)

    # self-attention -> cross-attention -> FFN (one decoder layer)
    x = mha(x, x, self_mask,
            sa_wq, sa_bq, sa_wkv, sa_bkv, sa_wo, sa_bo, sa_g, sa_beta)
    x = mha(x, enc, enc_mask,
            ca_wq, ca_bq, ca_wkv, ca_bkv, ca_wo, ca_bo, ca_g, ca_beta)
    h1 = jnp.maximum(jnp.dot(x.astype(mxu_dtype), f_w1[...],
                             preferred_element_type=jnp.float32) + f_b1[...], 0.0)
    o = jnp.dot(h1.astype(mxu_dtype), f_w2[...],
                preferred_element_type=jnp.float32) + f_b2[...]
    x = layernorm(o + x, f_g, f_beta)

    x_sc[...] = x

    @pl.when(li == n_layers - 1)
    def _():
        o_ref[...] = x


# ----------------------------------------------------------------------------
# Wrapper-side parameter re-layout (stack over layers, fuse Wk||Wv) — free JAX
# ----------------------------------------------------------------------------
def _pack_params(params, mxu_dtype):
    layers = params["layers"]

    def stack(fn, dtype=jnp.float32):
        return jnp.stack([fn(lp) for lp in layers], axis=0).astype(dtype)

    def attn(name):
        return [
            stack(lambda lp: lp[name]["wq"], mxu_dtype),           # (nl, D, H*dk)
            stack(lambda lp: lp[name]["bq"]),                      # (nl, 1, H*dk)
            stack(lambda lp: jnp.concatenate(
                [lp[name]["wk"], lp[name]["wv"]], axis=-1), mxu_dtype),
            stack(lambda lp: jnp.concatenate(
                [lp[name]["bk"], lp[name]["bv"]], axis=-1)),
            stack(lambda lp: lp[name]["wo"], mxu_dtype),           # (nl, H*dv, D)
            stack(lambda lp: lp[name]["bo"]),
            stack(lambda lp: lp[name]["ln_g"]),
            stack(lambda lp: lp[name]["ln_b"]),
        ]

    ffn = [
        stack(lambda lp: lp["ffn"]["w1"], mxu_dtype),
        stack(lambda lp: lp["ffn"]["b1"]),
        stack(lambda lp: lp["ffn"]["w2"], mxu_dtype),
        stack(lambda lp: lp["ffn"]["b2"]),
        stack(lambda lp: lp["ffn"]["ln_g"]),
        stack(lambda lp: lp["ffn"]["ln_b"]),
    ]
    return attn("self_attn") + attn("enc_attn") + ffn


# ----------------------------------------------------------------------------
# Parameter init (deterministic, synthetic) — mirrors the PyTorch module
# ----------------------------------------------------------------------------
def _lin(key, fan_in, shape):
    bound = 1.0 / np.sqrt(fan_in)
    return jax.random.uniform(key, shape, jnp.float32, -bound, bound)


def init_params(key, n_layers, d_k, d_v, d_model, d_ff, n_heads,
                max_seq_len, tgt_vocab_size):
    keys = jax.random.split(key, 1 + n_layers)
    params = {}
    # nn.Embedding default init: N(0, 1)
    params["tgt_emb"] = jax.random.normal(keys[0], (tgt_vocab_size, d_model),
                                          jnp.float32)
    # Sinusoidal positional table, row 0 = pad (zeros), positions start at 1.
    n_pos = max_seq_len * 10
    pos = np.arange(n_pos, dtype=np.float32)[:, None]
    j = np.arange(d_model, dtype=np.float32)[None, :]
    angle = pos / np.power(10000.0, 2.0 * np.floor(j / 2.0) / d_model)
    table = np.zeros((n_pos, d_model), np.float32)
    table[:, 0::2] = np.sin(angle[:, 0::2])
    table[:, 1::2] = np.cos(angle[:, 1::2])
    params["pos_table"] = jnp.concatenate(
        [jnp.zeros((1, d_model), jnp.float32), jnp.asarray(table)], axis=0)

    def attn_params(k):
        ks = jax.random.split(k, 4)
        return {
            "wq": _lin(ks[0], d_model, (d_model, n_heads * d_k)),
            "bq": jnp.zeros((1, n_heads * d_k), jnp.float32),
            "wk": _lin(ks[1], d_model, (d_model, n_heads * d_k)),
            "bk": jnp.zeros((1, n_heads * d_k), jnp.float32),
            "wv": _lin(ks[2], d_model, (d_model, n_heads * d_v)),
            "bv": jnp.zeros((1, n_heads * d_v), jnp.float32),
            "wo": _lin(ks[3], n_heads * d_v, (n_heads * d_v, d_model)),
            "bo": jnp.zeros((1, d_model), jnp.float32),
            "ln_g": jnp.ones((1, d_model), jnp.float32),
            "ln_b": jnp.zeros((1, d_model), jnp.float32),
        }

    def ffn_params(k):
        ks = jax.random.split(k, 2)
        return {
            "w1": _lin(ks[0], d_model, (d_model, d_ff)),
            "b1": jnp.zeros((1, d_ff), jnp.float32),
            "w2": _lin(ks[1], d_ff, (d_ff, d_model)),
            "b2": jnp.zeros((1, d_model), jnp.float32),
            "ln_g": jnp.ones((1, d_model), jnp.float32),
            "ln_b": jnp.zeros((1, d_model), jnp.float32),
        }

    layers = []
    for li in range(n_layers):
        ks = jax.random.split(keys[1 + li], 3)
        layers.append({
            "self_attn": attn_params(ks[0]),
            "enc_attn": attn_params(ks[1]),
            "ffn": ffn_params(ks[2]),
        })
    params["layers"] = layers
    return params


# ----------------------------------------------------------------------------
# Decoder forward: JAX glue (embeddings / packing) + ONE pipelined Pallas call
# ----------------------------------------------------------------------------
def decoder_forward(params, dec_inputs, dec_inputs_len, enc_inputs, enc_outputs,
                    n_heads, d_k, d_v, return_attn=False,
                    mxu_dtype=jnp.bfloat16):
    B, L = dec_inputs.shape
    D = params["tgt_emb"].shape[1]
    n_layers = len(params["layers"])
    Lk = enc_outputs.shape[1]

    # token embedding + positional encoding (positions 1..len, 0 = pad) in JAX
    emb = jnp.take(params["tgt_emb"], dec_inputs, axis=0)               # (B, L, D)
    pos_idx = jnp.arange(1, L + 1, dtype=jnp.int32)[None, :]            # (1, L)
    pos_idx = jnp.where(pos_idx <= dec_inputs_len[:, None], pos_idx, 0)
    pos = jnp.take(params["pos_table"], pos_idx, axis=0)                # (B, L, D)
    x = (emb + pos).astype(jnp.float32)                                 # (B, L, D)
    # dropout_emb: identity in eval mode

    enc = enc_outputs.astype(jnp.float32)                               # (B, Lk, D)
    dec_tok = dec_inputs.astype(jnp.int32).reshape(B, 1, L)
    if enc_inputs is not None:
        enc_tok = enc_inputs.astype(jnp.int32).reshape(B, 1, Lk)
    else:
        enc_tok = jnp.zeros((B, 1, Lk), jnp.int32)   # never == -1 -> unmasked

    weights = _pack_params(params, mxu_dtype)

    kernel = functools.partial(
        _decoder_layer_kernel, n_layers=n_layers, n_heads=n_heads,
        d_k=d_k, d_v=d_v, mxu_dtype=mxu_dtype)

    # scoped-VMEM budget from the actual footprint (double-buffered weights)
    def _nbytes(a):
        return int(np.prod(a.shape)) * a.dtype.itemsize
    per_layer_w = sum(_nbytes(w) for w in weights) // max(n_layers, 1)
    act_bytes = (2 * L * D + Lk * D) * 4
    vmem_limit = int(np.clip(4 * per_layer_w + 8 * act_bytes + (2 << 20),
                             32 << 20, 64 << 20))

    in_specs = [
        pl.BlockSpec((None, L, D), lambda b, li: (b, 0, 0)),    # embedded x
        pl.BlockSpec((None, Lk, D), lambda b, li: (b, 0, 0)),   # encoder out
        pl.BlockSpec((None, 1, L), lambda b, li: (b, 0, 0)),    # dec token ids
        pl.BlockSpec((None, 1, Lk), lambda b, li: (b, 0, 0)),   # enc token ids
    ] + [pl.BlockSpec((None,) + w.shape[1:], lambda b, li: (li, 0, 0))
         for w in weights]                                      # per-layer weights

    out = pl.pallas_call(
        kernel,
        out_shape=jax.ShapeDtypeStruct((B, L, D), jnp.float32),
        grid_spec=pltpu.PrefetchScalarGridSpec(
            num_scalar_prefetch=0,
            grid=(B, n_layers),
            in_specs=in_specs,
            out_specs=pl.BlockSpec((None, L, D), lambda b, li: (b, 0, 0)),
            scratch_shapes=[pltpu.VMEM((L, D), jnp.float32)],
        ),
        compiler_params=pltpu.CompilerParams(
            dimension_semantics=("parallel", "arbitrary"),
            vmem_limit_bytes=vmem_limit),
    )(x, enc, dec_tok, enc_tok, *weights)

    dec_self_attns, dec_enc_attns = [], []
    return out, dec_self_attns, dec_enc_attns


# ----------------------------------------------------------------------------
if __name__ == "__main__":
    n_layers, d_k, d_v, d_model, d_ff, n_heads = 2, 16, 16, 32, 64, 2
    max_seq_len, tgt_vocab_size = 16, 50
    B, L_dec, L_enc = 2, 8, 8

    params = init_params(jax.random.PRNGKey(0), n_layers, d_k, d_v, d_model,
                         d_ff, n_heads, max_seq_len, tgt_vocab_size)

    k1, k2, k3 = jax.random.split(jax.random.PRNGKey(0), 3)
    dec_inputs = jax.random.randint(k1, (B, L_dec), 0, tgt_vocab_size, jnp.int32)
    dec_inputs_len = jnp.array([L_dec, L_dec - 3], jnp.int32)
    enc_inputs = jax.random.randint(k2, (B, L_enc), 0, tgt_vocab_size, jnp.int32)
    enc_inputs = enc_inputs.at[1, -2:].set(-1)   # pad tokens (pad id = -1 per spec)
    enc_outputs = jax.random.normal(k3, (B, L_enc, d_model), jnp.float32)

    fwd = functools.partial(decoder_forward, n_heads=n_heads, d_k=d_k, d_v=d_v)
    dec_out, _, _ = jax.jit(fwd)(params, dec_inputs, dec_inputs_len,
                                 enc_inputs, enc_outputs)
    jax.block_until_ready(dec_out)
    assert dec_out.shape == (B, L_dec, d_model)
    assert bool(jnp.all(jnp.isfinite(dec_out)))
    print("KERNEL_OK")
</pallas_src>

<mosaic_0001>
module attributes {stable_mosaic.version = 11 : i64} {
  func.func @_decoder_layer_kernel(%arg0: i32, %arg1: i32, %arg2: memref<1x8x32xf32, #tpu.memory_space<vmem>>, %arg3: memref<1x8x32xf32, #tpu.memory_space<vmem>>, %arg4: memref<1x1x8xi32, #tpu.memory_space<vmem>>, %arg5: memref<1x1x8xi32, #tpu.memory_space<vmem>>, %arg6: memref<1x32x32xbf16, #tpu.memory_space<vmem>>, %arg7: memref<1x1x32xf32, #tpu.memory_space<vmem>>, %arg8: memref<1x32x64xbf16, #tpu.memory_space<vmem>>, %arg9: memref<1x1x64xf32, #tpu.memory_space<vmem>>, %arg10: memref<1x32x32xbf16, #tpu.memory_space<vmem>>, %arg11: memref<1x1x32xf32, #tpu.memory_space<vmem>>, %arg12: memref<1x1x32xf32, #tpu.memory_space<vmem>>, %arg13: memref<1x1x32xf32, #tpu.memory_space<vmem>>, %arg14: memref<1x32x32xbf16, #tpu.memory_space<vmem>>, %arg15: memref<1x1x32xf32, #tpu.memory_space<vmem>>, %arg16: memref<1x32x64xbf16, #tpu.memory_space<vmem>>, %arg17: memref<1x1x64xf32, #tpu.memory_space<vmem>>, %arg18: memref<1x32x32xbf16, #tpu.memory_space<vmem>>, %arg19: memref<1x1x32xf32, #tpu.memory_space<vmem>>, %arg20: memref<1x1x32xf32, #tpu.memory_space<vmem>>, %arg21: memref<1x1x32xf32, #tpu.memory_space<vmem>>, %arg22: memref<1x32x64xbf16, #tpu.memory_space<vmem>>, %arg23: memref<1x1x64xf32, #tpu.memory_space<vmem>>, %arg24: memref<1x64x32xbf16, #tpu.memory_space<vmem>>, %arg25: memref<1x1x32xf32, #tpu.memory_space<vmem>>, %arg26: memref<1x1x32xf32, #tpu.memory_space<vmem>>, %arg27: memref<1x1x32xf32, #tpu.memory_space<vmem>>, %arg28: memref<1x8x32xf32, #tpu.memory_space<vmem>>, %arg29: memref<8x32xf32, #tpu.memory_space<vmem>>) attributes {dimension_semantics = [#tpu.dimension_semantics<parallel>, #tpu.dimension_semantics<arbitrary>], iteration_bounds = array<i64: 2, 2>, scalar_prefetch = 0 : i64, scratch_operands = 1 : i64, tpu.core_type = #tpu.core_type<tc>, window_params = [{transform_indices = @transform_0, window_bounds = array<i64: 1, 8, 32>}, {transform_indices = @transform_1, window_bounds = array<i64: 1, 8, 32>}, {transform_indices = @transform_2, window_bounds = array<i64: 1, 1, 8>}, {transform_indices = @transform_3, window_bounds = array<i64: 1, 1, 8>}, {transform_indices = @transform_4, window_bounds = array<i64: 1, 32, 32>}, {transform_indices = @transform_5, window_bounds = array<i64: 1, 1, 32>}, {transform_indices = @transform_6, window_bounds = array<i64: 1, 32, 64>}, {transform_indices = @transform_7, window_bounds = array<i64: 1, 1, 64>}, {transform_indices = @transform_8, window_bounds = array<i64: 1, 32, 32>}, {transform_indices = @transform_9, window_bounds = array<i64: 1, 1, 32>}, {transform_indices = @transform_10, window_bounds = array<i64: 1, 1, 32>}, {transform_indices = @transform_11, window_bounds = array<i64: 1, 1, 32>}, {transform_indices = @transform_12, window_bounds = array<i64: 1, 32, 32>}, {transform_indices = @transform_13, window_bounds = array<i64: 1, 1, 32>}, {transform_indices = @transform_14, window_bounds = array<i64: 1, 32, 64>}, {transform_indices = @transform_15, window_bounds = array<i64: 1, 1, 64>}, {transform_indices = @transform_16, window_bounds = array<i64: 1, 32, 32>}, {transform_indices = @transform_17, window_bounds = array<i64: 1, 1, 32>}, {transform_indices = @transform_18, window_bounds = array<i64: 1, 1, 32>}, {transform_indices = @transform_19, window_bounds = array<i64: 1, 1, 32>}, {transform_indices = @transform_20, window_bounds = array<i64: 1, 32, 64>}, {transform_indices = @transform_21, window_bounds = array<i64: 1, 1, 64>}, {transform_indices = @transform_22, window_bounds = array<i64: 1, 64, 32>}, {transform_indices = @transform_23, window_bounds = array<i64: 1, 1, 32>}, {transform_indices = @transform_24, window_bounds = array<i64: 1, 1, 32>}, {transform_indices = @transform_25, window_bounds = array<i64: 1, 1, 32>}, {transform_indices = @transform_26, window_bounds = array<i64: 1, 8, 32>}]} {
    %c0_i32 = arith.constant 0 : i32
    %0 = arith.cmpi eq, %arg1, %c0_i32 : i32
    %1 = arith.extui %0 : i1 to i32
    %c0_i32_0 = arith.constant 0 : i32
    %2 = arith.cmpi ne, %1, %c0_i32_0 : i32
    scf.if %2 {
      %c0_116 = arith.constant 0 : index
      %c0_117 = arith.constant 0 : index
      %c0_118 = arith.constant 0 : index
      %260 = vector.load %arg2[%c0_116, %c0_117, %c0_118] : memref<1x8x32xf32, #tpu.memory_space<vmem>>, vector<1x8x32xf32>
      %261 = vector.shape_cast %260 : vector<1x8x32xf32> to vector<8x32xf32>
      %c0_119 = arith.constant 0 : index
      %c0_120 = arith.constant 0 : index
      %262 = vector.load %arg29[%c0_119, %c0_120] : memref<8x32xf32, #tpu.memory_space<vmem>>, vector<8x32xf32>
      tpu.vector_store %arg29[%c0_119, %c0_120], %261 {strides = array<i32>} : memref<8x32xf32, #tpu.memory_space<vmem>>, vector<8x32xf32>,
    } else {
    }
    %c0 = arith.constant 0 : index
    %c0_1 = arith.constant 0 : index
    %3 = vector.load %arg29[%c0, %c0_1] : memref<8x32xf32, #tpu.memory_space<vmem>>, vector<8x32xf32>
    %c0_2 = arith.constant 0 : index
    %c0_3 = arith.constant 0 : index
    %c0_4 = arith.constant 0 : index
    %4 = vector.load %arg3[%c0_2, %c0_3, %c0_4] : memref<1x8x32xf32, #tpu.memory_space<vmem>>, vector<1x8x32xf32>
    %5 = vector.shape_cast %4 : vector<1x8x32xf32> to vector<8x32xf32>
    %c0_5 = arith.constant 0 : index
    %c0_6 = arith.constant 0 : index
    %c0_7 = arith.constant 0 : index
    %6 = vector.load %arg4[%c0_5, %c0_6, %c0_7] : memref<1x1x8xi32, #tpu.memory_space<vmem>>, vector<1x1x8xi32>
    %7 = vector.shape_cast %6 : vector<1x1x8xi32> to vector<1x8xi32>
    %c-1_i32 = arith.constant -1 : i32
    %8 = vector.broadcast %c-1_i32 : i32 to vector<1x8xi32>
    %9 = arith.cmpi eq, %7, %8 : vector<1x8xi32>
    %10 = tpu.iota {dimensions = array<i32: 1>} : vector<8x8xi32>
    %11 = tpu.iota {dimensions = array<i32: 0>} : vector<8x8xi32>
    %12 = arith.cmpi sgt, %10, %11 : vector<8x8xi32>
    %13 = vector.broadcast %9 : vector<1x8xi1> to vector<8x8xi1>
    %14 = arith.ori %12, %13 : vector<8x8xi1>
    %15 = vector.shape_cast %14 : vector<8x8xi1> to vector<1x8x8xi1>
    %c0_8 = arith.constant 0 : index
    %c0_9 = arith.constant 0 : index
    %c0_10 = arith.constant 0 : index
    %16 = vector.load %arg5[%c0_8, %c0_9, %c0_10] : memref<1x1x8xi32, #tpu.memory_space<vmem>>, vector<1x1x8xi32>
    %17 = vector.shape_cast %16 : vector<1x1x8xi32> to vector<1x8xi32>
    %c-1_i32_11 = arith.constant -1 : i32
    %18 = vector.broadcast %c-1_i32_11 : i32 to vector<1x8xi32>
    %19 = arith.cmpi eq, %17, %18 : vector<1x8xi32>
    %20 = vector.shape_cast %19 : vector<1x8xi1> to vector<1x1x8xi1>
    %21 = arith.truncf %3 : vector<8x32xf32> to vector<8x32xbf16>
    %c0_12 = arith.constant 0 : index
    %c0_13 = arith.constant 0 : index
    %c0_14 = arith.constant 0 : index
    %22 = vector.load %arg6[%c0_12, %c0_13, %c0_14] : memref<1x32x32xbf16, #tpu.memory_space<vmem>>, vector<1x32x32xbf16>
    %23 = vector.shape_cast %22 : vector<1x32x32xbf16> to vector<32x32xbf16>
    %cst = arith.constant dense<0.000000e+00> : vector<8x32xf32>
    %24 = tpu.matmul %21, %23, %cst {dimension_numbers = #tpu.dot_dimension_numbers<[1], [0], [0], [1], [0, 0, 1, 1], [], []>} : vector<8x32xbf16>, vector<32x32xbf16>, vector<8x32xf32> -> vector<8x32xf32>
    %c0_15 = arith.constant 0 : index
    %c0_16 = arith.constant 0 : index
    %c0_17 = arith.constant 0 : index
    %25 = vector.load %arg7[%c0_15, %c0_16, %c0_17] : memref<1x1x32xf32, #tpu.memory_space<vmem>>, vector<1x1x32xf32>
    %26 = vector.shape_cast %25 : vector<1x1x32xf32> to vector<1x32xf32>
    %27 = vector.broadcast %26 : vector<1x32xf32> to vector<8x32xf32>
    %28 = arith.addf %24, %27 : vector<8x32xf32>
    %cst_18 = arith.constant 2.500000e-01 : f32
    %29 = vector.broadcast %cst_18 : f32 to vector<8x32xf32>
    %30 = arith.mulf %28, %29 : vector<8x32xf32>
    %31 = arith.truncf %3 : vector<8x32xf32> to vector<8x32xbf16>
    %c0_19 = arith.constant 0 : index
    %c0_20 = arith.constant 0 : index
    %c0_21 = arith.constant 0 : index
    %32 = vector.load %arg8[%c0_19, %c0_20, %c0_21] : memref<1x32x64xbf16, #tpu.memory_space<vmem>>, vector<1x32x64xbf16>
    %33 = vector.shape_cast %32 : vector<1x32x64xbf16> to vector<32x64xbf16>
    %cst_22 = arith.constant dense<0.000000e+00> : vector<8x64xf32>
    %34 = tpu.matmul %31, %33, %cst_22 {dimension_numbers = #tpu.dot_dimension_numbers<[1], [0], [0], [1], [0, 0, 1, 1], [], []>} : vector<8x32xbf16>, vector<32x64xbf16>, vector<8x64xf32> -> vector<8x64xf32>
    %c0_23 = arith.constant 0 : index
    %c0_24 = arith.constant 0 : index
    %c0_25 = arith.constant 0 : index
    %35 = vector.load %arg9[%c0_23, %c0_24, %c0_25] : memref<1x1x64xf32, #tpu.memory_space<vmem>>, vector<1x1x64xf32>
    %36 = vector.shape_cast %35 : vector<1x1x64xf32> to vector<1x64xf32>
    %37 = vector.broadcast %36 : vector<1x64xf32> to vector<8x64xf32>
    %38 = arith.addf %34, %37 : vector<8x64xf32>
    %39 = vector.extract_strided_slice %38 {offsets = [0, 0], sizes = [8, 32], strides = [1, 1]} : vector<8x64xf32> to vector<8x32xf32>
    %40 = vector.extract_strided_slice %38 {offsets = [0, 32], sizes = [8, 32], strides = [1, 1]} : vector<8x64xf32> to vector<8x32xf32>
    %41 = vector.extract_strided_slice %30 {offsets = [0, 0], sizes = [8, 16], strides = [1, 1]} : vector<8x32xf32> to vector<8x16xf32>
    %42 = vector.extract_strided_slice %30 {offsets = [0, 16], sizes = [8, 16], strides = [1, 1]} : vector<8x32xf32> to vector<8x16xf32>
    %43 = vector.shape_cast %41 : vector<8x16xf32> to vector<1x8x16xf32>
    %44 = vector.shape_cast %42 : vector<8x16xf32> to vector<1x8x16xf32>
    %45 = tpu.concatenate %43, %44 in 0 : vector<1x8x16xf32>, vector<1x8x16xf32> -> vector<2x8x16xf32>
    %46 = vector.extract_strided_slice %39 {offsets = [0, 0], sizes = [8, 16], strides = [1, 1]} : vector<8x32xf32> to vector<8x16xf32>
    %47 = vector.extract_strided_slice %39 {offsets = [0, 16], sizes = [8, 16], strides = [1, 1]} : vector<8x32xf32> to vector<8x16xf32>
    %48 = vector.shape_cast %46 : vector<8x16xf32> to vector<1x8x16xf32>
    %49 = vector.shape_cast %47 : vector<8x16xf32> to vector<1x8x16xf32>
    %50 = tpu.concatenate %48, %49 in 0 : vector<1x8x16xf32>, vector<1x8x16xf32> -> vector<2x8x16xf32>
    %51 = vector.extract_strided_slice %40 {offsets = [0, 0], sizes = [8, 16], strides = [1, 1]} : vector<8x32xf32> to vector<8x16xf32>
    %52 = vector.extract_strided_slice %40 {offsets = [0, 16], sizes = [8, 16], strides = [1, 1]} : vector<8x32xf32> to vector<8x16xf32>
    %53 = vector.shape_cast %51 : vector<8x16xf32> to vector<1x8x16xf32>
    %54 = vector.shape_cast %52 : vector<8x16xf32> to vector<1x8x16xf32>
    %55 = tpu.concatenate %53, %54 in 0 : vector<1x8x16xf32>, vector<1x8x16xf32> -> vector<2x8x16xf32>
    %56 = arith.truncf %45 : vector<2x8x16xf32> to vector<2x8x16xbf16>
    %57 = arith.truncf %50 : vector<2x8x16xf32> to vector<2x8x16xbf16>
    "tpu.trace_start"() <{level = 10 : i32, message = "hqd,hkd->hqk"}> : () -> ()
    %cst_26 = arith.constant dense<0.000000e+00> : vector<2x8x8xf32>
    %58 = tpu.matmul %56, %57, %cst_26 {dimension_numbers = #tpu.dot_dimension_numbers<[2], [2], [1], [1], [0, 0, 0, 1, 1, 1], [0], [0]>} : vector<2x8x16xbf16>, vector<2x8x16xbf16>, vector<2x8x8xf32> -> vector<2x8x8xf32>
    %cst_27 = arith.constant -1.000000e+09 : f32
    "tpu.trace_stop"() : () -> ()
    %59 = vector.shape_cast %15 : vector<1x8x8xi1> to vector<1x8x8xi1>
    %60 = vector.broadcast %59 : vector<1x8x8xi1> to vector<2x8x8xi1>
    %61 = vector.broadcast %cst_27 : f32 to vector<2x8x8xf32>
    %62 = arith.select %60, %61, %58 : vector<2x8x8xi1>, vector<2x8x8xf32>
    %cst_28 = arith.constant dense<0xFF800000> : vector<2x8xf32>
    %63 = vector.multi_reduction <maximumf>, %62, %cst_28 [2] : vector<2x8x8xf32> to vector<2x8xf32>
    %64 = vector.shape_cast %63 : vector<2x8xf32> to vector<2x8x1xf32>
    %65 = vector.broadcast %64 : vector<2x8x1xf32> to vector<2x8x8xf32>
    %66 = arith.subf %62, %65 : vector<2x8x8xf32>
    %67 = math.exp %66 : vector<2x8x8xf32>
    %cst_29 = arith.constant dense<0.000000e+00> : vector<2x8xf32>
    %68 = vector.multi_reduction <add>, %67, %cst_29 [2] : vector<2x8x8xf32> to vector<2x8xf32>
    %69 = vector.shape_cast %68 : vector<2x8xf32> to vector<2x8x1xf32>
    %70 = tpu.reciprocal %69 {approx = true} : vector<2x8x1xf32> -> vector<2x8x1xf32>
    %71 = vector.broadcast %70 : vector<2x8x1xf32> to vector<2x8x8xf32>
    %72 = arith.mulf %67, %71 : vector<2x8x8xf32>
    %73 = arith.truncf %72 : vector<2x8x8xf32> to vector<2x8x8xbf16>
    %74 = arith.truncf %55 : vector<2x8x16xf32> to vector<2x8x16xbf16>
    "tpu.trace_start"() <{level = 10 : i32, message = "hqk,hkv->hqv"}> : () -> ()
    %cst_30 = arith.constant dense<0.000000e+00> : vector<2x8x16xf32>
    %75 = tpu.matmul %73, %74, %cst_30 {dimension_numbers = #tpu.dot_dimension_numbers<[2], [1], [1], [2], [0, 0, 0, 1, 1, 2], [0], [0]>} : vector<2x8x8xbf16>, vector<2x8x16xbf16>, vector<2x8x16xf32> -> vector<2x8x16xf32>
    "tpu.trace_stop"() : () -> ()
    %76 = vector.extract_strided_slice %75 {offsets = [0, 0, 0], sizes = [1, 8, 16], strides = [1, 1, 1]} : vector<2x8x16xf32> to vector<1x8x16xf32>
    %77 = vector.shape_cast %76 : vector<1x8x16xf32> to vector<8x16xf32>
    %78 = vector.extract_strided_slice %75 {offsets = [1, 0, 0], sizes = [1, 8, 16], strides = [1, 1, 1]} : vector<2x8x16xf32> to vector<1x8x16xf32>
    %79 = vector.shape_cast %78 : vector<1x8x16xf32> to vector<8x16xf32>
    %80 = tpu.concatenate %77, %79 in 1 : vector<8x16xf32>, vector<8x16xf32> -> vector<8x32xf32>
    %81 = arith.truncf %80 : vector<8x32xf32> to vector<8x32xbf16>
    %c0_31 = arith.constant 0 : index
    %c0_32 = arith.constant 0 : index
    %c0_33 = arith.constant 0 : index
    %82 = vector.load %arg10[%c0_31, %c0_32, %c0_33] : memref<1x32x32xbf16, #tpu.memory_space<vmem>>, vector<1x32x32xbf16>
    %83 = vector.shape_cast %82 : vector<1x32x32xbf16> to vector<32x32xbf16>
    %cst_34 = arith.constant dense<0.000000e+00> : vector<8x32xf32>
    %84 = tpu.matmul %81, %83, %cst_34 {dimension_numbers = #tpu.dot_dimension_numbers<[1], [0], [0], [1], [0, 0, 1, 1], [], []>} : vector<8x32xbf16>, vector<32x32xbf16>, vector<8x32xf32> -> vector<8x32xf32>
    %c0_35 = arith.constant 0 : index
    %c0_36 = arith.constant 0 : index
    %c0_37 = arith.constant 0 : index
    %85 = vector.load %arg11[%c0_35, %c0_36, %c0_37] : memref<1x1x32xf32, #tpu.memory_space<vmem>>, vector<1x1x32xf32>
    %86 = vector.shape_cast %85 : vector<1x1x32xf32> to vector<1x32xf32>
    %87 = vector.broadcast %86 : vector<1x32xf32> to vector<8x32xf32>
    %88 = arith.addf %84, %87 : vector<8x32xf32>
    %89 = arith.addf %88, %3 : vector<8x32xf32>
    %cst_38 = arith.constant dense<0.000000e+00> : vector<8xf32>
    %90 = vector.multi_reduction <add>, %89, %cst_38 [1] : vector<8x32xf32> to vector<8xf32>
    %91 = vector.shape_cast %90 : vector<8xf32> to vector<8x1xf32>
    %cst_39 = arith.constant 3.200000e+01 : f32
    %92 = vector.broadcast %cst_39 : f32 to vector<8x1xf32>
    %93 = arith.divf %91, %92 : vector<8x1xf32>
    %94 = vector.broadcast %93 : vector<8x1xf32> to vector<8x32xf32>
    %95 = arith.subf %89, %94 : vector<8x32xf32>
    %96 = arith.mulf %95, %95 : vector<8x32xf32>
    %cst_40 = arith.constant dense<0.000000e+00> : vector<8xf32>
    %97 = vector.multi_reduction <add>, %96, %cst_40 [1] : vector<8x32xf32> to vector<8xf32>
    %98 = vector.shape_cast %97 : vector<8xf32> to vector<8x1xf32>
    %cst_41 = arith.constant 3.200000e+01 : f32
    %99 = vector.broadcast %cst_41 : f32 to vector<8x1xf32>
    %100 = arith.divf %98, %99 : vector<8x1xf32>
    %101 = vector.broadcast %93 : vector<8x1xf32> to vector<8x32xf32>
    %102 = arith.subf %89, %101 : vector<8x32xf32>
    %cst_42 = arith.constant 9.99999997E-7 : f32
    %103 = vector.broadcast %cst_42 : f32 to vector<8x1xf32>
    %104 = arith.addf %100, %103 : vector<8x1xf32>
    %105 = math.rsqrt %104 : vector<8x1xf32>
    %106 = vector.broadcast %105 : vector<8x1xf32> to vector<8x32xf32>
    %107 = arith.mulf %102, %106 : vector<8x32xf32>
    %c0_43 = arith.constant 0 : index
    %c0_44 = arith.constant 0 : index
    %c0_45 = arith.constant 0 : index
    %108 = vector.load %arg12[%c0_43, %c0_44, %c0_45] : memref<1x1x32xf32, #tpu.memory_space<vmem>>, vector<1x1x32xf32>
    %109 = vector.shape_cast %108 : vector<1x1x32xf32> to vector<1x32xf32>
    %110 = vector.broadcast %109 : vector<1x32xf32> to vector<8x32xf32>
    %111 = arith.mulf %107, %110 : vector<8x32xf32>
    %c0_46 = arith.constant 0 : index
    %c0_47 = arith.constant 0 : index
    %c0_48 = arith.constant 0 : index
    %112 = vector.load %arg13[%c0_46, %c0_47, %c0_48] : memref<1x1x32xf32, #tpu.memory_space<vmem>>, vector<1x1x32xf32>
    %113 = vector.shape_cast %112 : vector<1x1x32xf32> to vector<1x32xf32>
    %114 = vector.broadcast %113 : vector<1x32xf32> to vector<8x32xf32>
    %115 = arith.addf %111, %114 : vector<8x32xf32>
    %116 = arith.truncf %115 : vector<8x32xf32> to vector<8x32xbf16>
    %c0_49 = arith.constant 0 : index
    %c0_50 = arith.constant 0 : index
    %c0_51 = arith.constant 0 : index
    %117 = vector.load %arg14[%c0_49, %c0_50, %c0_51] : memref<1x32x32xbf16, #tpu.memory_space<vmem>>, vector<1x32x32xbf16>
    %118 = vector.shape_cast %117 : vector<1x32x32xbf16> to vector<32x32xbf16>
    %cst_52 = arith.constant dense<0.000000e+00> : vector<8x32xf32>
    %119 = tpu.matmul %116, %118, %cst_52 {dimension_numbers = #tpu.dot_dimension_numbers<[1], [0], [0], [1], [0, 0, 1, 1], [], []>} : vector<8x32xbf16>, vector<32x32xbf16>, vector<8x32xf32> -> vector<8x32xf32>
    %c0_53 = arith.constant 0 : index
    %c0_54 = arith.constant 0 : index
    %c0_55 = arith.constant 0 : index
    %120 = vector.load %arg15[%c0_53, %c0_54, %c0_55] : memref<1x1x32xf32, #tpu.memory_space<vmem>>, vector<1x1x32xf32>
    %121 = vector.shape_cast %120 : vector<1x1x32xf32> to vector<1x32xf32>
    %122 = vector.broadcast %121 : vector<1x32xf32> to vector<8x32xf32>
    %123 = arith.addf %119, %122 : vector<8x32xf32>
    %cst_56 = arith.constant 2.500000e-01 : f32
    %124 = vector.broadcast %cst_56 : f32 to vector<8x32xf32>
    %125 = arith.mulf %123, %124 : vector<8x32xf32>
    %126 = arith.truncf %5 : vector<8x32xf32> to vector<8x32xbf16>
    %c0_57 = arith.constant 0 : index
    %c0_58 = arith.constant 0 : index
    %c0_59 = arith.constant 0 : index
    %127 = vector.load %arg16[%c0_57, %c0_58, %c0_59] : memref<1x32x64xbf16, #tpu.memory_space<vmem>>, vector<1x32x64xbf16>
    %128 = vector.shape_cast %127 : vector<1x32x64xbf16> to vector<32x64xbf16>
    %cst_60 = arith.constant dense<0.000000e+00> : vector<8x64xf32>
    %129 = tpu.matmul %126, %128, %cst_60 {dimension_numbers = #tpu.dot_dimension_numbers<[1], [0], [0], [1], [0, 0, 1, 1], [], []>} : vector<8x32xbf16>, vector<32x64xbf16>, vector<8x64xf32> -> vector<8x64xf32>
    %c0_61 = arith.constant 0 : index
    %c0_62 = arith.constant 0 : index
    %c0_63 = arith.constant 0 : index
    %130 = vector.load %arg17[%c0_61, %c0_62, %c0_63] : memref<1x1x64xf32, #tpu.memory_space<vmem>>, vector<1x1x64xf32>
    %131 = vector.shape_cast %130 : vector<1x1x64xf32> to vector<1x64xf32>
    %132 = vector.broadcast %131 : vector<1x64xf32> to vector<8x64xf32>
    %133 = arith.addf %129, %132 : vector<8x64xf32>
    %134 = vector.extract_strided_slice %133 {offsets = [0, 0], sizes = [8, 32], strides = [1, 1]} : vector<8x64xf32> to vector<8x32xf32>
    %135 = vector.extract_strided_slice %133 {offsets = [0, 32], sizes = [8, 32], strides = [1, 1]} : vector<8x64xf32> to vector<8x32xf32>
    %136 = vector.extract_strided_slice %125 {offsets = [0, 0], sizes = [8, 16], strides = [1, 1]} : vector<8x32xf32> to vector<8x16xf32>
    %137 = vector.extract_strided_slice %125 {offsets = [0, 16], sizes = [8, 16], strides = [1, 1]} : vector<8x32xf32> to vector<8x16xf32>
    %138 = vector.shape_cast %136 : vector<8x16xf32> to vector<1x8x16xf32>
    %139 = vector.shape_cast %137 : vector<8x16xf32> to vector<1x8x16xf32>
    %140 = tpu.concatenate %138, %139 in 0 : vector<1x8x16xf32>, vector<1x8x16xf32> -> vector<2x8x16xf32>
    %141 = vector.extract_strided_slice %134 {offsets = [0, 0], sizes = [8, 16], strides = [1, 1]} : vector<8x32xf32> to vector<8x16xf32>
    %142 = vector.extract_strided_slice %134 {offsets = [0, 16], sizes = [8, 16], strides = [1, 1]} : vector<8x32xf32> to vector<8x16xf32>
    %143 = vector.shape_cast %141 : vector<8x16xf32> to vector<1x8x16xf32>
    %144 = vector.shape_cast %142 : vector<8x16xf32> to vector<1x8x16xf32>
    %145 = tpu.concatenate %143, %144 in 0 : vector<1x8x16xf32>, vector<1x8x16xf32> -> vector<2x8x16xf32>
    %146 = vector.extract_strided_slice %135 {offsets = [0, 0], sizes = [8, 16], strides = [1, 1]} : vector<8x32xf32> to vector<8x16xf32>
    %147 = vector.extract_strided_slice %135 {offsets = [0, 16], sizes = [8, 16], strides = [1, 1]} : vector<8x32xf32> to vector<8x16xf32>
    %148 = vector.shape_cast %146 : vector<8x16xf32> to vector<1x8x16xf32>
    %149 = vector.shape_cast %147 : vector<8x16xf32> to vector<1x8x16xf32>
    %150 = tpu.concatenate %148, %149 in 0 : vector<1x8x16xf32>, vector<1x8x16xf32> -> vector<2x8x16xf32>
    %151 = arith.truncf %140 : vector<2x8x16xf32> to vector<2x8x16xbf16>
    %152 = arith.truncf %145 : vector<2x8x16xf32> to vector<2x8x16xbf16>
    "tpu.trace_start"() <{level = 10 : i32, message = "hqd,hkd->hqk"}> : () -> ()
    %cst_64 = arith.constant dense<0.000000e+00> : vector<2x8x8xf32>
    %153 = tpu.matmul %151, %152, %cst_64 {dimension_numbers = #tpu.dot_dimension_numbers<[2], [2], [1], [1], [0, 0, 0, 1, 1, 1], [0], [0]>} : vector<2x8x16xbf16>, vector<2x8x16xbf16>, vector<2x8x8xf32> -> vector<2x8x8xf32>
    %cst_65 = arith.constant -1.000000e+09 : f32
    "tpu.trace_stop"() : () -> ()
    %154 = vector.shape_cast %20 : vector<1x1x8xi1> to vector<1x1x8xi1>
    %155 = vector.broadcast %154 : vector<1x1x8xi1> to vector<2x8x8xi1>
    %156 = vector.broadcast %cst_65 : f32 to vector<2x8x8xf32>
    %157 = arith.select %155, %156, %153 : vector<2x8x8xi1>, vector<2x8x8xf32>
    %cst_66 = arith.constant dense<0xFF800000> : vector<2x8xf32>
    %158 = vector.multi_reduction <maximumf>, %157, %cst_66 [2] : vector<2x8x8xf32> to vector<2x8xf32>
    %159 = vector.shape_cast %158 : vector<2x8xf32> to vector<2x8x1xf32>
    %160 = vector.broadcast %159 : vector<2x8x1xf32> to vector<2x8x8xf32>
    %161 = arith.subf %157, %160 : vector<2x8x8xf32>
    %162 = math.exp %161 : vector<2x8x8xf32>
    %cst_67 = arith.constant dense<0.000000e+00> : vector<2x8xf32>
    %163 = vector.multi_reduction <add>, %162, %cst_67 [2] : vector<2x8x8xf32> to vector<2x8xf32>
    %164 = vector.shape_cast %163 : vector<2x8xf32> to vector<2x8x1xf32>
    %165 = tpu.reciprocal %164 {approx = true} : vector<2x8x1xf32> -> vector<2x8x1xf32>
    %166 = vector.broadcast %165 : vector<2x8x1xf32> to vector<2x8x8xf32>
    %167 = arith.mulf %162, %166 : vector<2x8x8xf32>
    %168 = arith.truncf %167 : vector<2x8x8xf32> to vector<2x8x8xbf16>
    %169 = arith.truncf %150 : vector<2x8x16xf32> to vector<2x8x16xbf16>
    "tpu.trace_start"() <{level = 10 : i32, message = "hqk,hkv->hqv"}> : () -> ()
    %cst_68 = arith.constant dense<0.000000e+00> : vector<2x8x16xf32>
    %170 = tpu.matmul %168, %169, %cst_68 {dimension_numbers = #tpu.dot_dimension_numbers<[2], [1], [1], [2], [0, 0, 0, 1, 1, 2], [0], [0]>} : vector<2x8x8xbf16>, vector<2x8x16xbf16>, vector<2x8x16xf32> -> vector<2x8x16xf32>
    "tpu.trace_stop"() : () -> ()
    %171 = vector.extract_strided_slice %170 {offsets = [0, 0, 0], sizes = [1, 8, 16], strides = [1, 1, 1]} : vector<2x8x16xf32> to vector<1x8x16xf32>
    %172 = vector.shape_cast %171 : vector<1x8x16xf32> to vector<8x16xf32>
    %173 = vector.extract_strided_slice %170 {offsets = [1, 0, 0], sizes = [1, 8, 16], strides = [1, 1, 1]} : vector<2x8x16xf32> to vector<1x8x16xf32>
    %174 = vector.shape_cast %173 : vector<1x8x16xf32> to vector<8x16xf32>
    %175 = tpu.concatenate %172, %174 in 1 : vector<8x16xf32>, vector<8x16xf32> -> vector<8x32xf32>
    %176 = arith.truncf %175 : vector<8x32xf32> to vector<8x32xbf16>
    %c0_69 = arith.constant 0 : index
    %c0_70 = arith.constant 0 : index
    %c0_71 = arith.constant 0 : index
    %177 = vector.load %arg18[%c0_69, %c0_70, %c0_71] : memref<1x32x32xbf16, #tpu.memory_space<vmem>>, vector<1x32x32xbf16>
    %178 = vector.shape_cast %177 : vector<1x32x32xbf16> to vector<32x32xbf16>
    %cst_72 = arith.constant dense<0.000000e+00> : vector<8x32xf32>
    %179 = tpu.matmul %176, %178, %cst_72 {dimension_numbers = #tpu.dot_dimension_numbers<[1], [0], [0], [1], [0, 0, 1, 1], [], []>} : vector<8x32xbf16>, vector<32x32xbf16>, vector<8x32xf32> -> vector<8x32xf32>
    %c0_73 = arith.constant 0 : index
    %c0_74 = arith.constant 0 : index
    %c0_75 = arith.constant 0 : index
    %180 = vector.load %arg19[%c0_73, %c0_74, %c0_75] : memref<1x1x32xf32, #tpu.memory_space<vmem>>, vector<1x1x32xf32>
    %181 = vector.shape_cast %180 : vector<1x1x32xf32> to vector<1x32xf32>
    %182 = vector.broadcast %181 : vector<1x32xf32> to vector<8x32xf32>
    %183 = arith.addf %179, %182 : vector<8x32xf32>
    %184 = arith.addf %183, %115 : vector<8x32xf32>
    %cst_76 = arith.constant dense<0.000000e+00> : vector<8xf32>
    %185 = vector.multi_reduction <add>, %184, %cst_76 [1] : vector<8x32xf32> to vector<8xf32>
    %186 = vector.shape_cast %185 : vector<8xf32> to vector<8x1xf32>
    %cst_77 = arith.constant 3.200000e+01 : f32
    %187 = vector.broadcast %cst_77 : f32 to vector<8x1xf32>
    %188 = arith.divf %186, %187 : vector<8x1xf32>
    %189 = vector.broadcast %188 : vector<8x1xf32> to vector<8x32xf32>
    %190 = arith.subf %184, %189 : vector<8x32xf32>
    %191 = arith.mulf %190, %190 : vector<8x32xf32>
    %cst_78 = arith.constant dense<0.000000e+00> : vector<8xf32>
    %192 = vector.multi_reduction <add>, %191, %cst_78 [1] : vector<8x32xf32> to vector<8xf32>
    %193 = vector.shape_cast %192 : vector<8xf32> to vector<8x1xf32>
    %cst_79 = arith.constant 3.200000e+01 : f32
    %194 = vector.broadcast %cst_79 : f32 to vector<8x1xf32>
    %195 = arith.divf %193, %194 : vector<8x1xf32>
    %196 = vector.broadcast %188 : vector<8x1xf32> to vector<8x32xf32>
    %197 = arith.subf %184, %196 : vector<8x32xf32>
    %cst_80 = arith.constant 9.99999997E-7 : f32
    %198 = vector.broadcast %cst_80 : f32 to vector<8x1xf32>
    %199 = arith.addf %195, %198 : vector<8x1xf32>
    %200 = math.rsqrt %199 : vector<8x1xf32>
    %201 = vector.broadcast %200 : vector<8x1xf32> to vector<8x32xf32>
    %202 = arith.mulf %197, %201 : vector<8x32xf32>
    %c0_81 = arith.constant 0 : index
    %c0_82 = arith.constant 0 : index
    %c0_83 = arith.constant 0 : index
    %203 = vector.load %arg20[%c0_81, %c0_82, %c0_83] : memref<1x1x32xf32, #tpu.memory_space<vmem>>, vector<1x1x32xf32>
    %204 = vector.shape_cast %203 : vector<1x1x32xf32> to vector<1x32xf32>
    %205 = vector.broadcast %204 : vector<1x32xf32> to vector<8x32xf32>
    %206 = arith.mulf %202, %205 : vector<8x32xf32>
    %c0_84 = arith.constant 0 : index
    %c0_85 = arith.constant 0 : index
    %c0_86 = arith.constant 0 : index
    %207 = vector.load %arg21[%c0_84, %c0_85, %c0_86] : memref<1x1x32xf32, #tpu.memory_space<vmem>>, vector<1x1x32xf32>
    %208 = vector.shape_cast %207 : vector<1x1x32xf32> to vector<1x32xf32>
    %209 = vector.broadcast %208 : vector<1x32xf32> to vector<8x32xf32>
    %210 = arith.addf %206, %209 : vector<8x32xf32>
    %211 = arith.truncf %210 : vector<8x32xf32> to vector<8x32xbf16>
    %c0_87 = arith.constant 0 : index
    %c0_88 = arith.constant 0 : index
    %c0_89 = arith.constant 0 : index
    %212 = vector.load %arg22[%c0_87, %c0_88, %c0_89] : memref<1x32x64xbf16, #tpu.memory_space<vmem>>, vector<1x32x64xbf16>
    %213 = vector.shape_cast %212 : vector<1x32x64xbf16> to vector<32x64xbf16>
    %cst_90 = arith.constant dense<0.000000e+00> : vector<8x64xf32>
    %214 = tpu.matmul %211, %213, %cst_90 {dimension_numbers = #tpu.dot_dimension_numbers<[1], [0], [0], [1], [0, 0, 1, 1], [], []>} : vector<8x32xbf16>, vector<32x64xbf16>, vector<8x64xf32> -> vector<8x64xf32>
    %c0_91 = arith.constant 0 : index
    %c0_92 = arith.constant 0 : index
    %c0_93 = arith.constant 0 : index
    %215 = vector.load %arg23[%c0_91, %c0_92, %c0_93] : memref<1x1x64xf32, #tpu.memory_space<vmem>>, vector<1x1x64xf32>
    %216 = vector.shape_cast %215 : vector<1x1x64xf32> to vector<1x64xf32>
    %217 = vector.broadcast %216 : vector<1x64xf32> to vector<8x64xf32>
    %218 = arith.addf %214, %217 : vector<8x64xf32>
    %cst_94 = arith.constant 0.000000e+00 : f32
    %219 = vector.broadcast %cst_94 : f32 to vector<8x64xf32>
    %220 = arith.maximumf %218, %219 : vector<8x64xf32>
    %221 = arith.truncf %220 : vector<8x64xf32> to vector<8x64xbf16>
    %c0_95 = arith.constant 0 : index
    %c0_96 = arith.constant 0 : index
    %c0_97 = arith.constant 0 : index
    %222 = vector.load %arg24[%c0_95, %c0_96, %c0_97] : memref<1x64x32xbf16, #tpu.memory_space<vmem>>, vector<1x64x32xbf16>
    %223 = vector.shape_cast %222 : vector<1x64x32xbf16> to vector<64x32xbf16>
    %cst_98 = arith.constant dense<0.000000e+00> : vector<8x32xf32>
    %224 = tpu.matmul %221, %223, %cst_98 {dimension_numbers = #tpu.dot_dimension_numbers<[1], [0], [0], [1], [0, 0, 1, 1], [], []>} : vector<8x64xbf16>, vector<64x32xbf16>, vector<8x32xf32> -> vector<8x32xf32>
    %c0_99 = arith.constant 0 : index
    %c0_100 = arith.constant 0 : index
    %c0_101 = arith.constant 0 : index
    %225 = vector.load %arg25[%c0_99, %c0_100, %c0_101] : memref<1x1x32xf32, #tpu.memory_space<vmem>>, vector<1x1x32xf32>
    %226 = vector.shape_cast %225 : vector<1x1x32xf32> to vector<1x32xf32>
    %227 = vector.broadcast %226 : vector<1x32xf32> to vector<8x32xf32>
    %228 = arith.addf %224, %227 : vector<8x32xf32>
    %229 = arith.addf %228, %210 : vector<8x32xf32>
    %cst_102 = arith.constant dense<0.000000e+00> : vector<8xf32>
    %230 = vector.multi_reduction <add>, %229, %cst_102 [1] : vector<8x32xf32> to vector<8xf32>
    %231 = vector.shape_cast %230 : vector<8xf32> to vector<8x1xf32>
    %cst_103 = arith.constant 3.200000e+01 : f32
    %232 = vector.broadcast %cst_103 : f32 to vector<8x1xf32>
    %233 = arith.divf %231, %232 : vector<8x1xf32>
    %234 = vector.broadcast %233 : vector<8x1xf32> to vector<8x32xf32>
    %235 = arith.subf %229, %234 : vector<8x32xf32>
    %236 = arith.mulf %235, %235 : vector<8x32xf32>
    %cst_104 = arith.constant dense<0.000000e+00> : vector<8xf32>
    %237 = vector.multi_reduction <add>, %236, %cst_104 [1] : vector<8x32xf32> to vector<8xf32>
    %238 = vector.shape_cast %237 : vector<8xf32> to vector<8x1xf32>
    %cst_105 = arith.constant 3.200000e+01 : f32
    %239 = vector.broadcast %cst_105 : f32 to vector<8x1xf32>
    %240 = arith.divf %238, %239 : vector<8x1xf32>
    %241 = vector.broadcast %233 : vector<8x1xf32> to vector<8x32xf32>
    %242 = arith.subf %229, %241 : vector<8x32xf32>
    %cst_106 = arith.constant 9.99999997E-7 : f32
    %243 = vector.broadcast %cst_106 : f32 to vector<8x1xf32>
    %244 = arith.addf %240, %243 : vector<8x1xf32>
    %245 = math.rsqrt %244 : vector<8x1xf32>
    %246 = vector.broadcast %245 : vector<8x1xf32> to vector<8x32xf32>
    %247 = arith.mulf %242, %246 : vector<8x32xf32>
    %c0_107 = arith.constant 0 : index
    %c0_108 = arith.constant 0 : index
    %c0_109 = arith.constant 0 : index
    %248 = vector.load %arg26[%c0_107, %c0_108, %c0_109] : memref<1x1x32xf32, #tpu.memory_space<vmem>>, vector<1x1x32xf32>
    %249 = vector.shape_cast %248 : vector<1x1x32xf32> to vector<1x32xf32>
    %250 = vector.broadcast %249 : vector<1x32xf32> to vector<8x32xf32>
    %251 = arith.mulf %247, %250 : vector<8x32xf32>
    %c0_110 = arith.constant 0 : index
    %c0_111 = arith.constant 0 : index
    %c0_112 = arith.constant 0 : index
    %252 = vector.load %arg27[%c0_110, %c0_111, %c0_112] : memref<1x1x32xf32, #tpu.memory_space<vmem>>, vector<1x1x32xf32>
    %253 = vector.shape_cast %252 : vector<1x1x32xf32> to vector<1x32xf32>
    %254 = vector.broadcast %253 : vector<1x32xf32> to vector<8x32xf32>
    %255 = arith.addf %251, %254 : vector<8x32xf32>
    %c0_113 = arith.constant 0 : index
    %c0_114 = arith.constant 0 : index
    %256 = vector.load %arg29[%c0_113, %c0_114] : memref<8x32xf32, #tpu.memory_space<vmem>>, vector<8x32xf32>
    tpu.vector_store %arg29[%c0_113, %c0_114], %255 {strides = array<i32>} : memref<8x32xf32, #tpu.memory_space<vmem>>, vector<8x32xf32>,
    %c1_i32 = arith.constant 1 : i32
    %257 = arith.cmpi eq, %arg1, %c1_i32 : i32
    %258 = arith.extui %257 : i1 to i32
    %c0_i32_115 = arith.constant 0 : i32
    %259 = arith.cmpi ne, %258, %c0_i32_115 : i32
    scf.if %259 {
      %c0_116 = arith.constant 0 : index
      %c0_117 = arith.constant 0 : index
      %c0_118 = arith.constant 0 : index
      %260 = vector.load %arg28[%c0_116, %c0_117, %c0_118] : memref<1x8x32xf32, #tpu.memory_space<vmem>>, vector<1x8x32xf32>
      %261 = vector.shape_cast %260 : vector<1x8x32xf32> to vector<8x32xf32>
      %262 = vector.shape_cast %255 : vector<8x32xf32> to vector<1x8x32xf32>
      tpu.vector_store %arg28[%c0_116, %c0_117, %c0_118], %262 {strides = array<i32>} : memref<1x8x32xf32, #tpu.memory_space<vmem>>, vector<1x8x32xf32>,
    } else {
    }
    return
  }
  func.func @transform_0(%arg0: i32, %arg1: i32) -> (i32, i32, i32) {
    %c0_i32 = arith.constant 0 : i32
    %c0_i32_0 = arith.constant 0 : i32
    %c0_i32_1 = arith.constant 0 : i32
    return %arg0, %c0_i32, %c0_i32_0 : i32, i32, i32
  }
  func.func @transform_1(%arg0: i32, %arg1: i32) -> (i32, i32, i32) {
    %c0_i32 = arith.constant 0 : i32
    %c0_i32_0 = arith.constant 0 : i32
    %c0_i32_1 = arith.constant 0 : i32
    return %arg0, %c0_i32, %c0_i32_0 : i32, i32, i32
  }
  func.func @transform_2(%arg0: i32, %arg1: i32) -> (i32, i32, i32) {
    %c0_i32 = arith.constant 0 : i32
    %c0_i32_0 = arith.constant 0 : i32
    %c0_i32_1 = arith.constant 0 : i32
    return %arg0, %c0_i32, %c0_i32_0 : i32, i32, i32
  }
  func.func @transform_3(%arg0: i32, %arg1: i32) -> (i32, i32, i32) {
    %c0_i32 = arith.constant 0 : i32
    %c0_i32_0 = arith.constant 0 : i32
    %c0_i32_1 = arith.constant 0 : i32
    return %arg0, %c0_i32, %c0_i32_0 : i32, i32, i32
  }
  func.func @transform_4(%arg0: i32, %arg1: i32) -> (i32, i32, i32) {
    %c0_i32 = arith.constant 0 : i32
    %c0_i32_0 = arith.constant 0 : i32
    %c0_i32_1 = arith.constant 0 : i32
    return %arg1, %c0_i32, %c0_i32_0 : i32, i32, i32
  }
  func.func @transform_5(%arg0: i32, %arg1: i32) -> (i32, i32, i32) {
    %c0_i32 = arith.constant 0 : i32
    %c0_i32_0 = arith.constant 0 : i32
    %c0_i32_1 = arith.constant 0 : i32
    return %arg1, %c0_i32, %c0_i32_0 : i32, i32, i32
  }
  func.func @transform_6(%arg0: i32, %arg1: i32) -> (i32, i32, i32) {
    %c0_i32 = arith.constant 0 : i32
    %c0_i32_0 = arith.constant 0 : i32
    %c0_i32_1 = arith.constant 0 : i32
    return %arg1, %c0_i32, %c0_i32_0 : i32, i32, i32
  }
  func.func @transform_7(%arg0: i32, %arg1: i32) -> (i32, i32, i32) {
    %c0_i32 = arith.constant 0 : i32
    %c0_i32_0 = arith.constant 0 : i32
    %c0_i32_1 = arith.constant 0 : i32
    return %arg1, %c0_i32, %c0_i32_0 : i32, i32, i32
  }
  func.func @transform_8(%arg0: i32, %arg1: i32) -> (i32, i32, i32) {
    %c0_i32 = arith.constant 0 : i32
    %c0_i32_0 = arith.constant 0 : i32
    %c0_i32_1 = arith.constant 0 : i32
    return %arg1, %c0_i32, %c0_i32_0 : i32, i32, i32
  }
  func.func @transform_9(%arg0: i32, %arg1: i32) -> (i32, i32, i32) {
    %c0_i32 = arith.constant 0 : i32
    %c0_i32_0 = arith.constant 0 : i32
    %c0_i32_1 = arith.constant 0 : i32
    return %arg1, %c0_i32, %c0_i32_0 : i32, i32, i32
  }
  func.func @transform_10(%arg0: i32, %arg1: i32) -> (i32, i32, i32) {
    %c0_i32 = arith.constant 0 : i32
    %c0_i32_0 = arith.constant 0 : i32
    %c0_i32_1 = arith.constant 0 : i32
    return %arg1, %c0_i32, %c0_i32_0 : i32, i32, i32
  }
  func.func @transform_11(%arg0: i32, %arg1: i32) -> (i32, i32, i32) {
    %c0_i32 = arith.constant 0 : i32
    %c0_i32_0 = arith.constant 0 : i32
    %c0_i32_1 = arith.constant 0 : i32
    return %arg1, %c0_i32, %c0_i32_0 : i32, i32, i32
  }
  func.func @transform_12(%arg0: i32, %arg1: i32) -> (i32, i32, i32) {
    %c0_i32 = arith.constant 0 : i32
    %c0_i32_0 = arith.constant 0 : i32
    %c0_i32_1 = arith.constant 0 : i32
    return %arg1, %c0_i32, %c0_i32_0 : i32, i32, i32
  }
  func.func @transform_13(%arg0: i32, %arg1: i32) -> (i32, i32, i32) {
    %c0_i32 = arith.constant 0 : i32
    %c0_i32_0 = arith.constant 0 : i32
    %c0_i32_1 = arith.constant 0 : i32
    return %arg1, %c0_i32, %c0_i32_0 : i32, i32, i32
  }
  func.func @transform_14(%arg0: i32, %arg1: i32) -> (i32, i32, i32) {
    %c0_i32 = arith.constant 0 : i32
    %c0_i32_0 = arith.constant 0 : i32
    %c0_i32_1 = arith.constant 0 : i32
    return %arg1, %c0_i32, %c0_i32_0 : i32, i32, i32
  }
  func.func @transform_15(%arg0: i32, %arg1: i32) -> (i32, i32, i32) {
    %c0_i32 = arith.constant 0 : i32
    %c0_i32_0 = arith.constant 0 : i32
    %c0_i32_1 = arith.constant 0 : i32
    return %arg1, %c0_i32, %c0_i32_0 : i32, i32, i32
  }
  func.func @transform_16(%arg0: i32, %arg1: i32) -> (i32, i32, i32) {
    %c0_i32 = arith.constant 0 : i32
    %c0_i32_0 = arith.constant 0 : i32
    %c0_i32_1 = arith.constant 0 : i32
    return %arg1, %c0_i32, %c0_i32_0 : i32, i32, i32
  }
  func.func @transform_17(%arg0: i32, %arg1: i32) -> (i32, i32, i32) {
    %c0_i32 = arith.constant 0 : i32
    %c0_i32_0 = arith.constant 0 : i32
    %c0_i32_1 = arith.constant 0 : i32
    return %arg1, %c0_i32, %c0_i32_0 : i32, i32, i32
  }
  func.func @transform_18(%arg0: i32, %arg1: i32) -> (i32, i32, i32) {
    %c0_i32 = arith.constant 0 : i32
    %c0_i32_0 = arith.constant 0 : i32
    %c0_i32_1 = arith.constant 0 : i32
    return %arg1, %c0_i32, %c0_i32_0 : i32, i32, i32
  }
  func.func @transform_19(%arg0: i32, %arg1: i32) -> (i32, i32, i32) {
    %c0_i32 = arith.constant 0 : i32
    %c0_i32_0 = arith.constant 0 : i32
    %c0_i32_1 = arith.constant 0 : i32
    return %arg1, %c0_i32, %c0_i32_0 : i32, i32, i32
  }
  func.func @transform_20(%arg0: i32, %arg1: i32) -> (i32, i32, i32) {
    %c0_i32 = arith.constant 0 : i32
    %c0_i32_0 = arith.constant 0 : i32
    %c0_i32_1 = arith.constant 0 : i32
    return %arg1, %c0_i32, %c0_i32_0 : i32, i32, i32
  }
  func.func @transform_21(%arg0: i32, %arg1: i32) -> (i32, i32, i32) {
    %c0_i32 = arith.constant 0 : i32
    %c0_i32_0 = arith.constant 0 : i32
    %c0_i32_1 = arith.constant 0 : i32
    return %arg1, %c0_i32, %c0_i32_0 : i32, i32, i32
  }
  func.func @transform_22(%arg0: i32, %arg1: i32) -> (i32, i32, i32) {
    %c0_i32 = arith.constant 0 : i32
    %c0_i32_0 = arith.constant 0 : i32
    %c0_i32_1 = arith.constant 0 : i32
    return %arg1, %c0_i32, %c0_i32_0 : i32, i32, i32
  }
  func.func @transform_23(%arg0: i32, %arg1: i32) -> (i32, i32, i32) {
    %c0_i32 = arith.constant 0 : i32
    %c0_i32_0 = arith.constant 0 : i32
    %c0_i32_1 = arith.constant 0 : i32
    return %arg1, %c0_i32, %c0_i32_0 : i32, i32, i32
  }
  func.func @transform_24(%arg0: i32, %arg1: i32) -> (i32, i32, i32) {
    %c0_i32 = arith.constant 0 : i32
    %c0_i32_0 = arith.constant 0 : i32
    %c0_i32_1 = arith.constant 0 : i32
    return %arg1, %c0_i32, %c0_i32_0 : i32, i32, i32
  }
  func.func @transform_25(%arg0: i32, %arg1: i32) -> (i32, i32, i32) {
    %c0_i32 = arith.constant 0 : i32
    %c0_i32_0 = arith.constant 0 : i32
    %c0_i32_1 = arith.constant 0 : i32
    return %arg1, %c0_i32, %c0_i32_0 : i32, i32, i32
  }
  func.func @transform_26(%arg0: i32, %arg1: i32) -> (i32, i32, i32) {
    %c0_i32 = arith.constant 0 : i32
    %c0_i32_0 = arith.constant 0 : i32
    %c0_i32_1 = arith.constant 0 : i32
    return %arg0, %c0_i32, %c0_i32_0 : i32, i32, i32
  }
}

</mosaic_0001>

<bundles_post_ra>
// kernel: decoder_forward.1
= control target key start
LH: loop header
LB: loop body
LE: loop exit
PB: predicated region body
PF: predicated region fallthrough
CT: control target
= control target key end

     0   :  { %s3777_s0 = inlined_call_operand.vmem [shape: f32[2,8,32], index: 0, kind: input, shape index: {}]   ;;  %s3778_s1 = inlined_call_operand.vmem [shape: f32[2,8,32], index: 1, kind: input, shape index: {}]   ;;  %s3779_s2 = inlined_call_operand.vmem [shape: s32[2,1,8], index: 2, kind: input, shape index: {}]   ;;  %s3780_s3 = inlined_call_operand.vmem [shape: s32[2,1,8], index: 3, kind: input, shape index: {}]   ;;  %s3781_s4 = inlined_call_operand.vmem [shape: bf16[2,32,32], index: 4, kind: input, shape index: {}]   ;;  %s3782_s5 = inlined_call_operand.vmem [shape: f32[2,1,32], index: 5, kind: input, shape index: {}]   ;;  %s3783_s6 = inlined_call_operand.vmem [shape: bf16[2,32,64], index: 6, kind: input, shape index: {}]   ;;  %s3784_s7 = inlined_call_operand.vmem [shape: f32[2,1,64], index: 7, kind: input, shape index: {}]   ;;  %s3785_s8 = inlined_call_operand.vmem [shape: bf16[2,32,32], index: 8, kind: input, shape index: {}]   ;;  %s3786_s9 = inlined_call_operand.vmem [shape: f32[2,1,32], index: 9, kind: input, shape index: {}]   ;;  %s3787_s10 = inlined_call_operand.vmem [shape: f32[2,1,32], index: 10, kind: input, shape index: {}]   ;;  %s3788_s11 = inlined_call_operand.vmem [shape: f32[2,1,32], index: 11, kind: input, shape index: {}]   ;;  %s3789_s12 = inlined_call_operand.vmem [shape: bf16[2,32,32], index: 12, kind: input, shape index: {}]   ;;  %s3790_s13 = inlined_call_operand.vmem [shape: f32[2,1,32], index: 13, kind: input, shape index: {}]   ;;  %s3791_s14 = inlined_call_operand.vmem [shape: bf16[2,32,64], index: 14, kind: input, shape index: {}]   ;;  %s3792_s15 = inlined_call_operand.vmem [shape: f32[2,1,64], index: 15, kind: input, shape index: {}]   ;;  %s3793_s16 = inlined_call_operand.vmem [shape: bf16[2,32,32], index: 16, kind: input, shape index: {}]   ;;  %s3794_s17 = inlined_call_operand.vmem [shape: f32[2,1,32], index: 17, kind: input, shape index: {}]   ;;  %s3795_s18 = inlined_call_operand.vmem [shape: f32[2,1,32], index: 18, kind: input, shape index: {}]   ;;  %s3796_s19 = inlined_call_operand.vmem [shape: f32[2,1,32], index: 19, kind: input, shape index: {}]   ;;  %s3797_s20 = inlined_call_operand.vmem [shape: bf16[2,32,64], index: 20, kind: input, shape index: {}]   ;;  %s3798_s21 = inlined_call_operand.vmem [shape: f32[2,1,64], index: 21, kind: input, shape index: {}]   ;;  %s3799_s22 = inlined_call_operand.vmem [shape: bf16[2,64,32], index: 22, kind: input, shape index: {}]   ;;  %s3800_s23 = inlined_call_operand.vmem [shape: f32[2,1,32], index: 23, kind: input, shape index: {}]   ;;  %s3801_s24 = inlined_call_operand.vmem [shape: f32[2,1,32], index: 24, kind: input, shape index: {}]   ;;  %s3802_s25 = inlined_call_operand.vmem [shape: f32[2,1,32], index: 25, kind: input, shape index: {}]   ;;  %s3803_s26 = inlined_call_operand.hbm [shape: f32[2,8,32], index: 26, kind: output, shape index: {}]  }
   0x1   :  { %3824 = sst [smem:[#allocation24_spill]] %s3777_s0 }
   0x2   :  { %3825 = sst [smem:[#allocation25_spill]] %s3778_s1 }
   0x3   :  { %3826 = sst [smem:[#allocation26_spill]] %s3779_s2 }
   0x4   :  { %3827 = sst [smem:[#allocation27_spill]] %s3780_s3 }
   0x5   :  { %3828 = sst [smem:[#allocation28_spill]] %s3781_s4 }
   0x6   :  { %3829 = sst [smem:[#allocation29_spill]] %s3782_s5 }
   0x7   :  { %3830 = sst [smem:[#allocation30_spill]] %s3783_s6 }
   0x8   :  { %3831 = sst [smem:[#allocation31_spill]] %s3784_s7 }
   0x9   :  { %3832 = sst [smem:[#allocation32_spill]] %s3785_s8 }
   0xa   :  { %3833 = sst [smem:[#allocation33_spill]] %s3786_s9 }
   0xb   :  { %3834 = sst [smem:[#allocation34_spill]] %s3787_s10 }
   0xc   :  { %3835 = sst [smem:[#allocation35_spill]] %s3789_s12 }
   0xd   :  { %3836 = sst [smem:[#allocation36_spill]] %s3791_s14 }
   0xe   :  { %3837 = sst [smem:[#allocation37_spill]] %s3793_s16 }
   0xf   :  { %3838 = sst [smem:[#allocation38_spill]] %s3794_s17 }
  0x10   :  { %3839 = sst [smem:[#allocation39_spill]] %s3795_s18 }
  0x11   :  { %3840 = sst [smem:[#allocation40_spill]] %s3796_s19 }
  0x12   :  { %3841 = sst [smem:[#allocation41_spill]] %s3797_s20 }
  0x13   :  { %3842 = sst [smem:[#allocation42_spill]] %s3798_s21 }
  0x14   :  { %3843 = sst [smem:[#allocation43_spill]] %s3799_s22 }
  0x15   :  { %3844 = sst [smem:[#allocation44_spill]] %s3800_s23 }
  0x16   :  { %3845 = sst [smem:[#allocation45_spill]] %s3801_s24 }
  0x17   :  { %3846 = sst [smem:[#allocation46_spill]] %s3802_s25 }
  0x18   :  { %3847 = sst [smem:[#allocation47_spill]] %s3803_s26 }
  0x19   :  { %31 = vsyncpa [#allocation4], 0 }
  0x1a   :  { %33 = vsyncpa [#allocation4 + $0x1], 0  ;;  %s3288_s27 = smov 0   ;;  %s3290_s3 = smov 0  }
  0x1b   :  { %s3292_s7 = smov 0   ;;  %s3294_s28 = smov 0  }
  0x1c   :  { %s3296_s8 = smov 0   ;;  %s3298_s4 = smov 0  }
  0x1d   :  { %s3300_s29 = smov 0   ;;  %s3302_s0 = smov 0  }
  0x1e LB: > { %3848 = sst [smem:[#allocation6_spill]] %s3116_s27  ;;  %s2689_s9 = sadd.s32 4294967295, %s3144_s0   ;;  %s3144_s0 = sphi %s3302_s0, %s39_s0   ;;  %s3140_s29 = sphi %s3300_s29, %s3937_s29   ;;  %s3136_s4 = sphi %s3298_s4, %s3936_s4   ;;  %s3132_s8 = sphi %s3296_s8, %s3935_s8   ;;  %s3128_s28 = sphi %s3294_s28, %s3934_s28   ;;  %s3124_s7 = sphi %s3292_s7, %s3933_s7   ;;  %s3120_s3 = sphi %s3290_s3, %s3932_s3   ;;  %s3116_s27 = sphi %s3288_s27, %s3931_s27  }
  0x1f   : > { %3849 = sst [smem:[#allocation7_spill]] %s3120_s3  ;;  %s2690_s30 = sadd.s32 4294967294, %s3144_s0  }
  0x20   : > { %3850 = sst [smem:[#allocation8_spill]] %s3124_s7  ;;  %s48_s2 = sadd.s32 1, %s3136_s4 }
  0x21   : > { %3851 = sst [smem:[#allocation9_spill]] %s3128_s28  ;;  %p49_p0 = scmp.ge.s32.totalorder %s48_s2, 2 }
  0x22   : > { %3852 = sst [smem:[#allocation10_spill]] %s3132_s8  ;;  %s51_s5 = sadd.s32 1, %s3140_s29 }
  0x23   : > { %3853 = sst [smem:[#allocation11_spill]] %s3136_s4  ;;  %p744_p1 = scmp.ne.s32.totalorder %s3124_s7, %s3120_s3 }
  0x24   : > { %3854 = sst [smem:[#allocation12_spill]] %s3140_s29  ;;  %p745_p2 = scmp.eq.s32.totalorder %s2689_s9, 3 }
  0x25   : > { %3855 = sst [smem:[#allocation13_spill]] %s3144_s0  ;;  %s3939_s2 = smov (%p49_p0, %s48_s2), 0 }
  0x26   : > { %3856 = sst [smem:[#allocation14_spill]] %s3939_s2  ;;  %s3941_s5 = smov (!%p49_p0, %s51_s5), %s3140_s29 }
  0x27   : > { %p3337_p3 = por %p745_p2, %p744_p1  ;;  %p750_p4 = scmp.ne.s32.totalorder %s3120_s3, %s3116_s27 }
  0x28   : > { %p53_p5 = scmp.ge.s32.totalorder %s3941_s5, 2  ;;  %p751_p6 = scmp.eq.s32.totalorder %s2690_s30, 3 }
  0x29   : > { %s3857_s10 = scalar_select %p3337_p3, 1, 0 }
  0x2a   : > { %p2693_p7 = scmp.ge.s32.totalorder %s3144_s0, 1  ;;  %p943_p8 = scmp.lt.s32.totalorder %s3144_s0, 5 }
  0x2b   : > { %3858 = sst [smem:[#allocation15_spill]] %s3857_s10  ;;  %s3943_s5 = smov (%p53_p5, %s3941_s5), 0 }
  0x2c   : > { %3859 = sst [smem:[#allocation16_spill]] %s3943_s5  ;;  %p3347_p9 = por %p751_p6, %p750_p4 }
  0x2d   : > { %p944_p10 = pnand %p2693_p7, %p943_p8  ;;  %s731_s1 = ssub.s32 %s3140_s29, %s3943_s5 }
  0x2e   : > { %s3860_s6 = scalar_select %p3347_p9, 1, 0 }
  0x2f   : > { %s734_s9 = sadd.s32 1, %s3124_s7  ;;  %p732_p11 = scmp.eq.s32.totalorder %s731_s1, 0 }
  0x30   : > { %3861 = sst [smem:[#allocation17_spill]] %s3860_s6  ;;  %947 = sbr.rel (%p944_p10) target bundleno = 4332 (0x10ec), region = 124 }
  0x31   : > { %s3355_s2 = scalar_select %p732_p11, %s3124_s7, %s734_s9  }
  0x33   : > { %3862 = sst [smem:[#allocation18_spill]] %s3355_s2 }
  0x37   : > { %s3808_s30 = sand.u32 1, %s3120_s3   ;;  %p1104_p12 = scmp.lt.s32.totalorder %s3132_s8, 1 }
  0x38   : > { %s3361_s4 = sshll.u32 %s3808_s30, 3  ;;  %p1118_p13 = scmp.lt.s32.totalorder %s3128_s28, 1 }
  0x39   : > { %s3365_s6 = scalar_select %p1104_p12, %s3132_s8, 1 }
  0x3a   : > { %s3368_s1 = scalar_select %p1118_p13, %s3128_s28, 1 }
  0x3b   : > { %3863 = sst [smem:[#allocation19_spill]] %s3365_s6  ;;  %s2695_s9 = sshll.u32 %s3365_s6, 3 }
  0x3c   : > { %s3865_s0 = sld [smem:[#allocation24_spill]]  ;;  %s3866_s8 = sld [smem:[#allocation25_spill]] }
  0x3d   : > { %s2767_s21 = sshll.u32 %s3368_s1, 4  ;;  %s3869_s5 = sld [smem:[#allocation28_spill]] }
  0x3e   : > { %s3872_s10 = sld [smem:[#allocation30_spill]]  ;;  %s3875_s29 = sld [smem:[#allocation32_spill]] }
  0x3f   : > { %s3878_s12 = sld [smem:[#allocation35_spill]]  ;;  %s3879_s14 = sld [smem:[#allocation36_spill]] }
  0x40   : > { %s3880_s16 = sld [smem:[#allocation37_spill]]  ;;  %s3888_s6 = sld [smem:[#allocation43_spill]] }
  0x41   : > { %s3889_s23 = sld [smem:[#allocation45_spill]]  ;;  %s1103_s24 = scalar_lea.vmem [#allocation3], %s3361_s4 }
  0x42   : > { %s1107_s26 = scalar_lea.vmem %s3865_s0, %s2695_s9  ;;  %s3381_s28 = scalar_lea.vmem %s3866_s8, %s2695_s9 }
  0x43   : > { %3867 = sst [smem:[#allocation20_spill]] %s3381_s28  ;;  %s3391_s30 = scalar_lea.vmem %s3869_s5, %s2767_s21 }
  0x44   : > { %3870 = sst [smem:[#allocation21_spill]] %s3391_s30  ;;  %s3400_s9 = scalar_lea.vmem %s3872_s10, %s2767_s21 }
  0x45   : > { %3873 = sst [smem:[#allocation22_spill]] %s3400_s9  ;;  %s3409_s5 = scalar_lea.vmem %s3875_s29, %s2767_s21 }
  0x46   : > { %s3426_s28 = scalar_lea.vmem %s3878_s12, %s2767_s21  ;;  %s3435_s2 = scalar_lea.vmem %s3879_s14, %s2767_s21 }
  0x47   : > { %s3444_s22 = scalar_lea.vmem %s3880_s16, %s2767_s21  ;;  %s3885_s8 = sld [smem:[#allocation41_spill]] }
  0x48   : > { %3881 = sst [smem:[#allocation23_spill]] %s3444_s22  ;;  %s3886_s14 = sld [smem:[#allocation42_spill]] }
  0x49   : > { %s2774_s22 = sshll.u32 %s3368_s1, 5  ;;  %s3887_s0 = sld [smem:[#allocation44_spill]] }
  0x4a   : > { %s3475_s18 = scalar_lea.vmem %s3888_s6, %s2774_s22  ;;  %s1196_s12 = scalar_lea.vmem %s3889_s23, %s3368_s1 }
  0x4d   : > { %s3461_s30 = scalar_lea.vmem %s3885_s8, %s2767_s21  ;;  %s3890_s8 = sld [smem:[#allocation46_spill]] }
  0x4e   : > { %s1185_s16 = scalar_lea.vmem %s3886_s14, %s3368_s1  ;;  %s3891_s14 = sld [smem:[#allocation9_spill]] }
  0x4f   : > { %s1193_s17 = scalar_lea.vmem %s3887_s0, %s3368_s1 }
  0x53   : > { %s1199_s19 = scalar_lea.vmem %s3890_s8, %s3368_s1 }
  0x54   : > { %p2713_p0 = scmp.ne.s32.totalorder %s3891_s14, 0 }
  0x55   : > { %v1205_v0 = vld [vmem:[%s1107_s26] sm:$0xff] (!%p2713_p0)  ;;  %vm1206_vm0 = vcmask (!%p2713_p0), 261120  }
  0x56   : > { %1204 = sbr.rel (%p2713_p0) target bundleno = 93 (0x5d), region = 128  ;;  %1207 = vst.msk [vmem:[#allocation2] sm:$0xff] (!%p2713_p0), %vm1206_vm0, %v1205_v0 }
  0x5d PF: > { %s3892_s0 = sld [smem:[#allocation22_spill]]  ;;  %s3893_s9 = sld [smem:[#allocation21_spill]]  ;;  %v3146_v2 = vmov 0.0   ;;  %vm3147_vm1 = vmmov 0   ;;  %v3495_v5 = vld [vmem:[#allocation2] sm:$0xff]  ;;  %vm1250_vm2 = vcmask 261120   ;;  %v1212_v33 = vlaneseq }
  0x5e   : > { %2825 = vmatprep.subr.bf16.mxu1 %v3146_v2  ;;  %2817 = vmatprep.subr.bf16.mxu0 %v3146_v2  ;;  %v1226_v7 = vpack.c.bf16 %v3495_v5, %v3495_v5  ;;  %s3894_s6 = sld [smem:[#allocation31_spill]]  ;;  %s3896_s20 = sld [smem:[#allocation29_spill]]  ;;  %vm1370_vm3 = vcmask 130048   ;;  %v3149_v37 = vmov 0   ;;  %vm1467_vm8 = vcmask 64512  }
  0x5f   : > { %2829 = vmatprep.mubr.msk.bf16.mxu1 %vm3147_vm1, %v3146_v2  ;;  %2821 = vmatprep.mubr.msk.bf16.mxu0 %vm3147_vm1, %v3146_v2  ;;  %s3148_s27 = smov 112   ;;  %s3898_s7 = sld [smem:[#allocation19_spill]]  ;;  %v3541_v35 = vshrl.u32 %v1212_v33, 7  ;;  %v1213_v39 = vand.u32 127, %v1212_v33  ;;  %vm1498_vm9 = vcmask 1043456   ;;  %vm2273_vm12 = vcmask 523264  }
  0x60   : > { %s3899_s8 = sld [smem:[#allocation26_spill]]  ;;  %s3901_s26 = sld [smem:[#allocation33_spill]] }
  0x61   : > { %v1220_v36 = vsub.s32 0, %v3541_v35  ;;  %vm1216_vm5 = vcmp.gt.s32.totalorder %v1213_v39, %v3541_v35  ;;  %v3017_v39 = vld [vmem:[%s3435_s2 + $0x8] sm:$0xff]   ;;  %s3904_s25 = sld [smem:[#allocation34_spill]]  ;;  %s3906_s3 = scalar_lea.vmem %s3788_s11, %s3368_s1 }
  0x63   : > { %v3010_v1 = vld [vmem:[%s3892_s0] sm:$0xff]   ;;  %v3012_v4 = vld [vmem:[%s3892_s0 + $0x8] sm:$0xff]   ;;  %s3150_s0 = smov 96  }
  0x64   : > { %v3011_v3 = vld [vmem:[%s3893_s9] sm:$0xff]   ;;  %2826 = vmatpush3.bf16.msra.mxu1 %v3010_v1  ;;  %v3013_v6 = vld [vmem:[%s3893_s9 + $0x8] sm:$0xff]   ;;  %s3895_s22 = scalar_lea.vmem %s3894_s6, %s3368_s1  ;;  %s3897_s29 = scalar_lea.vmem %s3896_s20, %s3368_s1 }
  0x65   : > { %2827 = vmatprep.subr.bf16.mxu1 %v3146_v2  ;;  %2818 = vmatpush3.bf16.msra.mxu0 %v3011_v3  ;;  %v2718_v8 = vld [vmem:[%s3895_s22] ss:$0 sm:$0xff]  ;;  %s3151_s9 = smov 16   ;;  %s3903_s22 = sld [smem:[#allocation20_spill]] }
  0x66   : > { %2819 = vmatprep.subr.bf16.mxu0 %v3146_v2  ;;  %v2714_v9 = vld [vmem:[%s3897_s29] ss:$0 sm:$0xff]  ;;  %s3900_s14 = scalar_lea.vmem %s3899_s8, %s3898_s7  ;;  %s3902_s6 = scalar_lea.vmem %s3901_s26, %s3368_s1 }
  0x67   : > { %v1210_v34 = vld [vmem:[%s3900_s14] sm:$0x1]  ;;  %s3905_s20 = scalar_lea.vmem %s3904_s25, %s3368_s1  ;;  %s3907_s14 = scalar_lea.vmem %s3792_s15, %s3368_s1 }
  0x68   : > { %2828 = vmatpush3.bf16.msra.mxu1 %v3012_v4  ;;  %vm1211_vm4 = vcmp.eq.s32.totalorder %v1210_v34, 4294967295  ;;  %s3908_s26 = scalar_lea.vmem %s3790_s13, %s3368_s1  ;;  %s3912_s25 = sld [smem:[#allocation38_spill]] }
  0x69   : > { %2820 = vmatpush3.bf16.msra.mxu0 %v3013_v6  ;;  %2839 = vmatprep.subr.bf16.mxu1 %v3146_v2  ;;  %v1217_v38 = vsel %vm1211_vm4, 1, %v3149_v37  ;;  %s3916_s8 = sld [smem:[#allocation40_spill]] }
  0x6a   : > { %2833 = vmatprep.subr.bf16.mxu0 %v3146_v2  ;;  %v1221_v40 = vrot.slane %v1217_v38, %v1220_v36  ;;  %v3016_v38 = vld [vmem:[%s3435_s2] sm:$0xff]   ;;  %s3909_s2 = sld [smem:[#allocation27_spill]] }
  0x6b   : > { %2830 = vmatmul.mubr.msk.bf16.vlgmr.msra.gmra.mrb[0].mxu1 %vm1250_vm2, %v1226_v7 }
  0x6c   : > { %2822 = vmatmul.mubr.msk.bf16.vlgmr.msra.gmra.mrb[0].mxu0 %vm1250_vm2, %v1226_v7  ;;  %2841 = vmatprep.mubr.msk.bf16.mxu1 %vm3147_vm1, %v3146_v2  ;;  %vm1222_vm6 = vcmp.eq.s32.totalorder %v1221_v40, 1  ;;  %v1209_v40 = vld [vmem:[%s3903_s22] sm:$0xff] }
  0x6d   : > { %2835 = vmatprep.mubr.msk.bf16.mxu0 %vm3147_vm1, %v3146_v2  ;;  %vm1223_vm7 = vmor %vm1216_vm5, %vm1222_vm6 }
  0x70   : > { %s3910_s10 = scalar_lea.vmem %s3909_s2, %s3898_s7 }
 0x13e   : > { %v1352_v10 = vpop.f32.mrb[0].mxu1 }
 0x13f   : > { %v1353_v11 = vadd.f32 %v2718_v8, %v1352_v10  ;;  %v2831_v12 = vpop.f32.mrb[1].mxu1  ;;  %v1288_v13 = vpop.f32.mrb[0].mxu0  ;;  %v3015_v10 = vld [vmem:[%s3409_s5 + $0x8] sm:$0xff]  }
 0x140   : > { %v1355_v14 = vpop.f32.mrb[2].mxu1  ;;  %v1289_v15 = vadd.f32 %v2714_v9, %v1288_v13  ;;  %v2823_v16 = vpop.f32.mrb[1].mxu0  ;;  %v3014_v9 = vld [vmem:[%s3409_s5] sm:$0xff]  }
 0x141   : > { %v3521_v17 = vpack.c.bf16 %v1353_v11, %v1353_v11  ;;  %1363 = vrot.lane.b32.xlu0 %v1353_v11, %s3148_s27  ;;  %v2832_v18 = vpop.f32.mrb[3].mxu1  ;;  %v1291_v19 = vpop.f32.mrb[2].mxu0 }
 0x142   : > { %v1294_v20 = vmul.f32 0.25, %v1289_v15  ;;  %v2824_v21 = vpop.f32.mrb[3].mxu0 }
 0x143   : > { %v1375_v22 = vsel %vm1370_vm3, %v3521_v17, 0 }
 0x144   : > { %2834 = vmatpush3.bf16.xpose.msra.mxu0 %v1375_v22  ;;  %v1366_v23 = vpack.c.bf16 %v1294_v20, %v1294_v20  ;;  %v2726_v22 = vld [vmem:[%s3902_s6] ss:$0 sm:$0xff] }
 0x145   : > { %1359 = vrot.lane.b32.xlu0 %v1294_v20, %s3148_s27  ;;  %2845 = vmatprep.subr.bf16.mxu0 %v3146_v2 }
 0x14b   : > { %2836 = vmatmul.mubr.msk.bf16.vlgmr.msra.gmra.mrb[4].mxu0 %vm1370_vm3, %v1366_v23 }
 0x14c   : > { %2847 = vmatprep.mubr.msk.bf16.mxu0 %vm3147_vm1, %v3146_v2 }
 0x1b3   : > { %v1364_v24 = vpop.permute.xlu0 %1363 }
 0x1b4   : > { %v1369_v25 = vpack.c.bf16 %v1364_v24, %v1364_v24 }
 0x1b6   : > { %v1421_v26 = vsel %vm1370_vm3, %v1369_v25, 0 }
 0x1b7   : > { %2840 = vmatpush3.bf16.xpose.msra.mxu1 %v1421_v26  ;;  %v1360_v27 = vpop.permute.xlu0 %1359 }
 0x1b8   : > { %2851 = vmatprep.subr.bf16.mxu1 %v3146_v2  ;;  %v1367_v28 = vpack.c.bf16 %v1360_v27, %v1360_v27 }
 0x1be   : > { %2842 = vmatmul.mubr.msk.bf16.vlgmr.msra.gmra.mrb[4].mxu1 %vm1370_vm3, %v1367_v28 }
 0x1bf   : > { %2853 = vmatprep.mubr.msk.bf16.mxu1 %vm3147_vm1, %v3146_v2 }
 0x21e   : > { %v1411_v29 = vpop.f32.mrb[4].mxu0 }
 0x21f   : > { %v2837_v30 = vpop.f32.mrb[5].mxu0  ;;  %v1465_v46 = vsel %vm1223_vm7, -1e+09, %v1411_v29 }
 0x220   : > { %v1414_v31 = vpop.f32.mrb[6].mxu0  ;;  %v1468_v48 = vsel %vm1467_vm8, %v1465_v46, -inf }
 0x221   : > { %v2838_v32 = vpop.f32.mrb[7].mxu0 }
 0x291   : > { %v1457_v41 = vpop.f32.mrb[4].mxu1 }
 0x292   : > { %v1466_v42 = vsel %vm1223_vm7, -1e+09, %v1457_v41  ;;  %v2843_v43 = vpop.f32.mrb[5].mxu1  ;;  %v3018_v41 = vld [vmem:[%s3426_s28] sm:$0xff]  }
 0x293   : > { %v1460_v44 = vpop.f32.mrb[6].mxu1  ;;  %v1471_v45 = vsel %vm1467_vm8, %v1466_v42, -inf }
 0x294   : > { %1472 = vmax.xlane.f32.xlu1 %v1471_v45  ;;  %v2844_v47 = vpop.f32.mrb[7].mxu1 }
 0x295   : > { %v2730_v47 = vld [vmem:[%s3905_s20] ss:$0 sm:$0xff]  ;;  %s3913_s20 = scalar_lea.vmem %s3912_s25, %s3368_s1 }
 0x298   : > { %1469 = vmax.xlane.f32.xlu1 %v1468_v48 }
 0x2a9   : > { %1543 = vrot.lane.b32.xlu1 %v1369_v25, %s3150_s0 }
 0x321   : > { %v1473_v49 = vpop.xlane.xlu1 %1472 }
 0x322   : > { %v1475_v50 = vsub.f32 %v1466_v42, %v1473_v49  ;;  %v3019_v42 = vld [vmem:[%s3426_s28 + $0x8] sm:$0xff]   ;;  %v2731_v49 = vld [vmem:[%s3906_s3] ss:$0 sm:$0xff] }
 0x324   : > { %v1478_v51 = vmul.f32 1.442695, %v1475_v50 }
 0x325   : > { %v1470_v52 = vpop.xlane.xlu1 %1469 }
 0x326   : > { %3028 = vpow2.f32 %v1478_v51  ;;  %v1474_v53 = vsub.f32 %v1465_v46, %v1470_v52 }
 0x328   : > { %v1476_v54 = vmul.f32 1.442695, %v1474_v53  ;;  %v2736_v53 = vld [vmem:[%s3907_s14] ss:$0 sm:$0xff]  ;;  %s3917_s14 = scalar_lea.vmem %s3916_s8, %s3368_s1 }
 0x329   : > { %v1544_v55 = vpop.permute.xlu1 %1543 }
 0x32a   : > { %3030 = vpow2.f32 %v1476_v54  ;;  %v1549_v56 = vsel %vm1498_vm9, %v1544_v55, 0 }
 0x32b   : > { %2852 = vmatpush3.bf16.msra.mxu1 %v1549_v56 }
 0x32c   : > { %2865 = vmatprep.subr.bf16.mxu1 %v3146_v2 }
 0x330   : > { %v3029_v57 = vpop.eup %3028 }
 0x331   : > { %v1483_v58 = vsel %vm1467_vm8, %v3029_v57, 0.0 }
 0x332   : > { %1484 = vadd.xlane.f32.xlu0 %v1483_v58 }
 0x334   : > { %v3031_v59 = vpop.eup %3030 }
 0x335   : > { %v1480_v60 = vsel %vm1467_vm8, %v3031_v59, 0.0 }
 0x336   : > { %1481 = vadd.xlane.f32.xlu1 %v1480_v60 }
 0x348   : > { %1493 = vrot.lane.b32.xlu0 %v3521_v17, %s3150_s0 }
 0x3bf   : > { %v1485_v61 = vpop.xlane.xlu0 %1484 }
 0x3c0   : > { %3032 = vrcp.f32 %v1485_v61 }
 0x3c3   : > { %v1494_v62 = vpop.permute.xlu0 %1493  ;;  %v1482_v63 = vpop.xlane.xlu1 %1481 }
 0x3c4   : > { %v1500_v0 = vsel %vm1498_vm9, %v1494_v62, 0  ;;  %3034 = vrcp.f32 %v1482_v63 }
 0x3c5   : > { %2846 = vmatpush3.bf16.msra.mxu0 %v1500_v0  ;;  %v2732_v0 = vld [vmem:[%s3908_s26] ss:$0 sm:$0xff] }
 0x3c6   : > { %2857 = vmatprep.subr.bf16.mxu0 %v3146_v2 }
 0x3ca   : > { %v3033_v1 = vpop.eup %3032 }
 0x3cb   : > { %v1489_v3 = vmul.f32 %v3033_v1, %v3029_v57 }
 0x3cd   : > { %v1491_v4 = vpack.c.bf16 %v1489_v3, %v1489_v3 }
 0x3ce   : > { %v3035_v6 = vpop.eup %3034 }
 0x3cf   : > { %v1488_v7 = vmul.f32 %v3035_v6, %v3031_v59  ;;  %2854 = vmatmul.mubr.msk.bf16.vlgmr.msra.gmra.mrb[8].mxu1 %vm1467_vm8, %v1491_v4 }
 0x3d0   : > { %2869 = vmatprep.mubr.msk.bf16.mxu1 %vm3147_vm1, %v3146_v2  ;;  %2866 = vmatpush3.bf16.msra.mxu1 %v3018_v41 }
 0x3d1   : > { %v1490_v8 = vpack.c.bf16 %v1488_v7, %v1488_v7  ;;  %2867 = vmatprep.subr.bf16.mxu1 %v3146_v2 }
 0x3d3   : > { %2848 = vmatmul.mubr.msk.bf16.vlgmr.msra.gmra.mrb[8].mxu0 %vm1467_vm8, %v1490_v8 }
 0x3d4   : > { %2861 = vmatprep.mubr.msk.bf16.mxu0 %vm3147_vm1, %v3146_v2  ;;  %2858 = vmatpush3.bf16.msra.mxu0 %v3014_v9 }
 0x3d5   : > { %2859 = vmatprep.subr.bf16.mxu0 %v3146_v2  ;;  %2868 = vmatpush3.bf16.msra.mxu1 %v3019_v42 }
 0x3d6   : > { %2881 = vmatprep.subr.bf16.mxu1 %v3146_v2 }
 0x3d8   : > { %2860 = vmatpush3.bf16.msra.mxu0 %v3015_v10 }
 0x3d9   : > { %2873 = vmatprep.subr.bf16.mxu0 %v3146_v2 }
 0x4a2   : > { %v1585_v11 = vpop.f32.mrb[8].mxu1 }
 0x4a3   : > { %1592 = vrot.lane.b32.xlu0 %v1585_v11, %s3151_s9  ;;  %v2855_v12 = vpop.f32.mrb[9].mxu1 }
 0x4a4   : > { %v1588_v13 = vpop.f32.mrb[10].mxu1  ;;  %v1224_v12 = vld [vmem:[%s3910_s10] sm:$0x1] }
 0x4a5   : > { %v2856_v14 = vpop.f32.mrb[11].mxu1  ;;  %vm1225_vm10 = vcmp.eq.s32.totalorder %v1224_v12, 4294967295 }
 0x4a6   : > { %v1536_v15 = vpop.f32.mrb[8].mxu0  ;;  %v1933_v13 = vsel %vm1225_vm10, 1, %v3149_v37 }
 0x4a7   : > { %v2849_v16 = vpop.f32.mrb[9].mxu0  ;;  %v1937_v14 = vrot.slane %v1933_v13, %v1220_v36  ;;  %v3022_v13 = vld [vmem:[%s3461_s30] sm:$0xff]  }
 0x4a8   : > { %v1539_v17 = vpop.f32.mrb[10].mxu0 }
 0x4a9   : > { %v2850_v18 = vpop.f32.mrb[11].mxu0  ;;  %vm1938_vm11 = vcmp.eq.s32.totalorder %v1937_v14, 1  ;;  %v3023_v14 = vld [vmem:[%s3461_s30 + $0x8] sm:$0xff]   ;;  %s3914_s30 = sld [smem:[#allocation39_spill]] }
 0x4af   : > { %s3915_s21 = scalar_lea.vmem %s3914_s30, %s3368_s1 }
 0x515   : > { %v1593_v19 = vpop.permute.xlu0 %1592 }
 0x516   : > { %v1595_v20 = vsel %vm1370_vm3, %v1536_v15, %v1593_v19 }
 0x517   : > { %v1596_v21 = vpack.c.bf16 %v1595_v20, %v1595_v20 }
 0x519   : > { %2862 = vmatmul.mubr.msk.bf16.vlgmr.msra.gmra.mrb[12].mxu0 %vm1250_vm2, %v1596_v21 }
 0x51a   : > { %2877 = vmatprep.mubr.msk.bf16.mxu0 %vm3147_vm1, %v3146_v2  ;;  %2874 = vmatpush3.bf16.msra.mxu0 %v3016_v38 }
 0x51b   : > { %2875 = vmatprep.subr.bf16.mxu0 %v3146_v2 }
 0x51e   : > { %2876 = vmatpush3.bf16.msra.mxu0 %v3017_v39 }
 0x51f   : > { %2887 = vmatprep.subr.bf16.mxu0 %v3146_v2 }
 0x5ec   : > { %v1657_v23 = vpop.f32.mrb[12].mxu0 }
 0x5ed   : > { %v1658_v24 = vadd.f32 %v2726_v22, %v1657_v23  ;;  %v2863_v25 = vpop.f32.mrb[13].mxu0 }
 0x5ee   : > { %v1660_v26 = vpop.f32.mrb[14].mxu0 }
 0x5ef   : > { %v2864_v27 = vpop.f32.mrb[15].mxu0  ;;  %v1663_v28 = vadd.f32 %v1658_v24, %v3495_v5  ;;  %v1762_v5 = vpack.c.bf16 %v1209_v40, %v1209_v40 }
 0x5f1   : > { %v1664_v29 = vsel %vm1250_vm2, %v1663_v28, 0.0  ;;  %2878 = vmatmul.mubr.msk.bf16.vlgmr.msra.gmra.mrb[16].mxu0 %vm1250_vm2, %v1762_v5 }
 0x5f2   : > { %1665 = vadd.xlane.f32.xlu1 %v1664_v29  ;;  %2889 = vmatprep.mubr.msk.bf16.mxu0 %vm3147_vm1, %v3146_v2 }
 0x67f   : > { %v1666_v30 = vpop.xlane.xlu1 %1665 }
 0x680   : > { %v1668_v31 = vmul.f32 0.03125, %v1666_v30 }
 0x682   : > { %v1669_v32 = vsub.f32 %v1663_v28, %v1668_v31 }
 0x684   : > { %v1670_v33 = vmul.f32 %v1669_v32, %v1669_v32 }
 0x686   : > { %v1671_v34 = vsel %vm1250_vm2, %v1670_v33, 0.0 }
 0x687   : > { %1672 = vadd.xlane.f32.xlu0 %v1671_v34 }
 0x6c4   : > { %v1823_v54 = vpop.f32.mrb[16].mxu0 }
 0x6c5   : > { %v1824_v55 = vadd.f32 %v2736_v53, %v1823_v54  ;;  %v2879_v56 = vpop.f32.mrb[17].mxu0 }
 0x6c6   : > { %v1826_v57 = vpop.f32.mrb[18].mxu0 }
 0x6c7   : > { %v2880_v58 = vpop.f32.mrb[19].mxu0  ;;  %1834 = vrot.lane.b32.xlu1 %v1824_v55, %s3148_s27  ;;  %v1839_v59 = vpack.c.bf16 %v1824_v55, %v1824_v55 }
 0x6c9   : > { %v1845_v60 = vsel %vm1370_vm3, %v1839_v59, 0 }
 0x714   : > { %v1673_v43 = vpop.xlane.xlu0 %1672 }
 0x715   : > { %v1674_v44 = vmul.f32 0.03125, %v1673_v43 }
 0x717   : > { %v1675_v45 = vadd.f32 1e-06, %v1674_v44 }
 0x719   : > { %3036 = vrsqrt.f32 %v1675_v45 }
 0x723   : > { %v3037_v46 = vpop.eup %3036 }
 0x724   : > { %v1677_v48 = vmul.f32 %v3037_v46, %v1669_v32 }
 0x726   : > { %v1685_v50 = vmul.f32 %v2730_v47, %v1677_v48 }
 0x728   : > { %v3604_v51 = vadd.f32 %v2731_v49, %v1685_v50 }
 0x72a   : > { %v1694_v52 = vpack.c.bf16 %v3604_v51, %v3604_v51 }
 0x72c   : > { %2870 = vmatmul.mubr.msk.bf16.vlgmr.msra.gmra.mrb[12].mxu1 %vm1250_vm2, %v1694_v52 }
 0x72d   : > { %2883 = vmatprep.mubr.msk.bf16.mxu1 %vm3147_vm1, %v3146_v2  ;;  %2882 = vmatpush3.bf16.xpose.msra.mxu1 %v1845_v60 }
 0x72e   : > { %2893 = vmatprep.subr.bf16.mxu1 %v3146_v2 }
 0x739   : > { %v1835_v61 = vpop.permute.xlu1 %1834 }
 0x73a   : > { %v1840_v62 = vpack.c.bf16 %v1835_v61, %v1835_v61 }
 0x73c   : > { %v1891_v63 = vsel %vm1370_vm3, %v1840_v62, 0 }
 0x73d   : > { %2888 = vmatpush3.bf16.xpose.msra.mxu0 %v1891_v63 }
 0x73e   : > { %2899 = vmatprep.subr.bf16.mxu0 %v3146_v2 }
 0x7ff   : > { %v1755_v1 = vpop.f32.mrb[12].mxu1 }
 0x800   : > { %v1756_v3 = vadd.f32 %v2732_v0, %v1755_v1  ;;  %v2871_v4 = vpop.f32.mrb[13].mxu1 }
 0x801   : > { %v1758_v6 = vpop.f32.mrb[14].mxu1 }
 0x802   : > { %v1761_v7 = vmul.f32 0.25, %v1756_v3  ;;  %v2872_v8 = vpop.f32.mrb[15].mxu1 }
 0x804   : > { %v1837_v9 = vpack.c.bf16 %v1761_v7, %v1761_v7  ;;  %1830 = vrot.lane.b32.xlu1 %v1761_v7, %s3148_s27  ;;  %s3911_s27 = sld [smem:[#allocation23_spill]] }
 0x806   : > { %2884 = vmatmul.mubr.msk.bf16.vlgmr.msra.gmra.mrb[16].mxu1 %vm1370_vm3, %v1837_v9 }
 0x807   : > { %2895 = vmatprep.mubr.msk.bf16.mxu1 %vm3147_vm1, %v3146_v2 }
 0x80a   : > { %v3020_v48 = vld [vmem:[%s3911_s27] sm:$0xff]   ;;  %v3021_v49 = vld [vmem:[%s3911_s27 + $0x8] sm:$0xff]  }
 0x876   : > { %v1831_v10 = vpop.permute.xlu1 %1830 }
 0x877   : > { %v1838_v11 = vpack.c.bf16 %v1831_v10, %v1831_v10 }
 0x879   : > { %2890 = vmatmul.mubr.msk.bf16.vlgmr.msra.gmra.mrb[20].mxu0 %vm1370_vm3, %v1838_v11 }
 0x87a   : > { %2901 = vmatprep.mubr.msk.bf16.mxu0 %vm3147_vm1, %v3146_v2 }
 0x8d9   : > { %v1881_v15 = vpop.f32.mrb[16].mxu1 }
 0x8da   : > { %v1939_v16 = vsel %vm1938_vm11, -1e+09, %v1881_v15  ;;  %v2885_v17 = vpop.f32.mrb[17].mxu1  ;;  %v3025_v15 = vld [vmem:[%s3475_s18 + $0x8] sm:$0xff]  }
 0x8db   : > { %v1884_v18 = vpop.f32.mrb[18].mxu1  ;;  %v1941_v19 = vsel %vm1467_vm8, %v1939_v16, -inf }
 0x8dc   : > { %1942 = vmax.xlane.f32.xlu0 %v1941_v19  ;;  %v2886_v20 = vpop.f32.mrb[19].mxu1 }
 0x8dd   : > { %v2748_v20 = vld [vmem:[%s3915_s21] ss:$0 sm:$0xff] }
 0x94c   : > { %v1927_v21 = vpop.f32.mrb[20].mxu0 }
 0x94d   : > { %v1940_v22 = vsel %vm1938_vm11, -1e+09, %v1927_v21  ;;  %v2891_v23 = vpop.f32.mrb[21].mxu0 }
 0x94e   : > { %v1930_v24 = vpop.f32.mrb[22].mxu0  ;;  %v1944_v25 = vsel %vm1467_vm8, %v1940_v22, -inf }
 0x94f   : > { %1945 = vmax.xlane.f32.xlu1 %v1944_v25  ;;  %v2892_v37 = vpop.f32.mrb[23].mxu0 }
 0x950   : > { %v3026_v37 = vld [vmem:[%s3475_s18 + $0x10] sm:$0xff]  }
 0x969   : > { %v1943_v26 = vpop.xlane.xlu0 %1942 }
 0x96a   : > { %v1947_v35 = vsub.f32 %v1939_v16, %v1943_v26  ;;  %v3027_v26 = vld [vmem:[%s3475_s18 + $0x18] sm:$0xff]  }
 0x96c   : > { %v1949_v36 = vmul.f32 1.442695, %v1947_v35  ;;  %v2750_v35 = vld [vmem:[%s1185_s16] ss:$0 sm:$0xff] }
 0x96e   : > { %3038 = vpow2.f32 %v1949_v36 }
 0x978   : > { %v3039_v27 = vpop.eup %3038 }
 0x979   : > { %v1953_v28 = vsel %vm1467_vm8, %v3039_v27, 0.0 }
 0x97a   : > { %1954 = vadd.xlane.f32.xlu1 %v1953_v28 }
 0x9dc   : > { %v1946_v29 = vpop.xlane.xlu1 %1945 }
 0x9dd   : > { %v1948_v30 = vsub.f32 %v1940_v22, %v1946_v29  ;;  %v2749_v22 = vld [vmem:[%s3917_s14] ss:$0 sm:$0xff] }
 0x9df   : > { %v1951_v31 = vmul.f32 1.442695, %v1948_v30 }
 0x9e1   : > { %3040 = vpow2.f32 %v1951_v31 }
 0x9eb   : > { %v3041_v32 = vpop.eup %3040 }
 0x9ec   : > { %v1956_v33 = vsel %vm1467_vm8, %v3041_v32, 0.0 }
 0x9ed   : > { %1957 = vadd.xlane.f32.xlu0 %v1956_v33 }
 0xa03   : > { %2015 = vrot.lane.b32.xlu0 %v1840_v62, %s3150_s0  ;;  %v2744_v62 = vld [vmem:[%s3913_s20] ss:$0 sm:$0xff] }
 0xa07   : > { %1966 = vrot.lane.b32.xlu0 %v1839_v59, %s3150_s0  ;;  %v1955_v34 = vpop.xlane.xlu1 %1954  ;;  %s3922_s0 = sld [smem:[#allocation9_spill]] }
 0xa08   : > { %3042 = vrcp.f32 %v1955_v34 }
 0xa0d   : > { %p2762_p1 = scmp.ne.s32.totalorder %s3922_s0, 1 }
 0xa12   : > { %v3043_v39 = vpop.eup %3042 }
 0xa13   : > { %v1961_v41 = vmul.f32 %v3043_v39, %v3039_v27 }
 0xa15   : > { %v1963_v45 = vpack.c.bf16 %v1961_v41, %v1961_v41 }
 0xa7a   : > { %v1958_v38 = vpop.xlane.xlu0 %1957 }
 0xa7b   : > { %3044 = vrcp.f32 %v1958_v38 }
 0xa7e   : > { %v2016_v40 = vpop.permute.xlu0 %2015 }
 0xa7f   : > { %v2021_v5 = vsel %vm1498_vm9, %v2016_v40, 0 }
 0xa80   : > { %2900 = vmatpush3.bf16.msra.mxu0 %v2021_v5 }
 0xa81   : > { %2913 = vmatprep.subr.bf16.mxu0 %v3146_v2 }
 0xa82   : > { %v1967_v42 = vpop.permute.xlu0 %1966 }
 0xa83   : > { %v1972_v43 = vsel %vm1498_vm9, %v1967_v42, 0 }
 0xa84   : > { %2894 = vmatpush3.bf16.msra.mxu1 %v1972_v43 }
 0xa85   : > { %v3045_v44 = vpop.eup %3044  ;;  %2905 = vmatprep.subr.bf16.mxu1 %v3146_v2 }
 0xa86   : > { %v1962_v46 = vmul.f32 %v3045_v44, %v3041_v32 }
 0xa87   : > { %2896 = vmatmul.mubr.msk.bf16.vlgmr.msra.gmra.mrb[20].mxu1 %vm1467_vm8, %v1963_v45 }
 0xa88   : > { %v1964_v47 = vpack.c.bf16 %v1962_v46, %v1962_v46  ;;  %2909 = vmatprep.mubr.msk.bf16.mxu1 %vm3147_vm1, %v3146_v2  ;;  %2906 = vmatpush3.bf16.msra.mxu1 %v3020_v48 }
 0xa89   : > { %2907 = vmatprep.subr.bf16.mxu1 %v3146_v2 }
 0xa8a   : > { %2902 = vmatmul.mubr.msk.bf16.vlgmr.msra.gmra.mrb[24].mxu0 %vm1467_vm8, %v1964_v47 }
 0xa8b   : > { %2917 = vmatprep.mubr.msk.bf16.mxu0 %vm3147_vm1, %v3146_v2  ;;  %2914 = vmatpush3.bf16.msra.mxu0 %v3022_v13 }
 0xa8c   : > { %2908 = vmatpush3.bf16.msra.mxu1 %v3021_v49  ;;  %2915 = vmatprep.subr.bf16.mxu0 %v3146_v2 }
 0xa8d   : > { %2921 = vmatprep.subr.bf16.mxu1 %v3146_v2 }
 0xa8f   : > { %2916 = vmatpush3.bf16.msra.mxu0 %v3023_v14 }
 0xb5a   : > { %v2008_v50 = vpop.f32.mrb[20].mxu1 }
 0xb5b   : > { %v2897_v52 = vpop.f32.mrb[21].mxu1 }
 0xb5c   : > { %v2011_v53 = vpop.f32.mrb[22].mxu1  ;;  %v2760_v52 = vld [vmem:[%s1196_s12] ss:$0 sm:$0xff] }
 0xb5d   : > { %v2898_v54 = vpop.f32.mrb[23].mxu1  ;;  %v2057_v55 = vpop.f32.mrb[24].mxu0 }
 0xb5e   : > { %2064 = vrot.lane.b32.xlu1 %v2057_v55, %s3151_s9  ;;  %v2903_v56 = vpop.f32.mrb[25].mxu0  ;;  %v2761_v54 = vld [vmem:[%s1199_s19] ss:$0 sm:$0xff] }
 0xb5f   : > { %v2060_v57 = vpop.f32.mrb[26].mxu0 }
 0xb60   : > { %v2904_v58 = vpop.f32.mrb[27].mxu0 }
 0xbd0   : > { %v2065_v59 = vpop.permute.xlu1 %2064 }
 0xbd1   : > { %v2067_v60 = vsel %vm1370_vm3, %v2008_v50, %v2065_v59 }
 0xbd2   : > { %v2068_v61 = vpack.c.bf16 %v2067_v60, %v2067_v60 }
 0xbd4   : > { %2910 = vmatmul.mubr.msk.bf16.vlgmr.msra.gmra.mrb[24].mxu1 %vm1250_vm2, %v2068_v61 }
 0xbd5   : > { %2929 = vmatprep.mubr.msk.bf16.mxu1 %vm3147_vm1, %v3146_v2 }
 0xca7   : > { %v2129_v63 = vpop.f32.mrb[24].mxu1 }
 0xca8   : > { %v2130_v0 = vadd.f32 %v2744_v62, %v2129_v63  ;;  %v2911_v1 = vpop.f32.mrb[25].mxu1 }
 0xca9   : > { %v2132_v3 = vpop.f32.mrb[26].mxu1 }
 0xcaa   : > { %v2912_v4 = vpop.f32.mrb[27].mxu1  ;;  %v2135_v6 = vadd.f32 %v2130_v0, %v3604_v51  ;;  %v3024_v51 = vld [vmem:[%s3475_s18] sm:$0xff]  }
 0xcab   : > { %2922 = vmatpush3.bf16.msra.mxu1 %v3024_v51 }
 0xcac   : > { %v2136_v7 = vsel %vm1250_vm2, %v2135_v6, 0.0  ;;  %2923 = vmatprep.subr.bf16.mxu1 %v3146_v2 }
 0xcad   : > { %2137 = vadd.xlane.f32.xlu0 %v2136_v7 }
 0xcaf   : > { %2924 = vmatpush3.bf16.msra.mxu1 %v3025_v15 }
 0xcb0   : > { %2925 = vmatprep.subr.bf16.mxu1 %v3146_v2 }
 0xcb3   : > { %2926 = vmatpush3.bf16.msra.mxu1 %v3026_v37 }
 0xcb4   : > { %2927 = vmatprep.subr.bf16.mxu1 %v3146_v2  ;;  %v2754_v2 = vld [vmem:[%s1193_s17] ss:$0 sm:$0xff] }
 0xcb7   : > { %2928 = vmatpush3.bf16.msra.mxu1 %v3027_v26 }
 0xd3a   : > { %v2138_v8 = vpop.xlane.xlu0 %2137 }
 0xd3b   : > { %v2139_v9 = vmul.f32 0.03125, %v2138_v8 }
 0xd3d   : > { %v2140_v10 = vsub.f32 %v2135_v6, %v2139_v9 }
 0xd3f   : > { %v2141_v11 = vmul.f32 %v2140_v10, %v2140_v10 }
 0xd41   : > { %v2142_v12 = vsel %vm1250_vm2, %v2141_v11, 0.0 }
 0xd42   : > { %2143 = vadd.xlane.f32.xlu1 %v2142_v12 }
 0xdcf   : > { %v2144_v16 = vpop.xlane.xlu1 %2143 }
 0xdd0   : > { %v2145_v17 = vmul.f32 0.03125, %v2144_v16 }
 0xdd2   : > { %v2146_v18 = vadd.f32 1e-06, %v2145_v17 }
 0xdd4   : > { %3046 = vrsqrt.f32 %v2146_v18 }
 0xdde   : > { %v3047_v19 = vpop.eup %3046 }
 0xddf   : > { %v2148_v21 = vmul.f32 %v3047_v19, %v2140_v10 }
 0xde1   : > { %v2156_v23 = vmul.f32 %v2748_v20, %v2148_v21 }
 0xde3   : > { %v2164_v24 = vadd.f32 %v2749_v22, %v2156_v23 }
 0xde5   : > { %v2165_v25 = vpack.c.bf16 %v2164_v24, %v2164_v24 }
 0xde7   : > { %2918 = vmatmul.mubr.msk.bf16.vlgmr.msra.gmra.mrb[28].mxu0 %vm1250_vm2, %v2165_v25 }
 0xeba   : > { %v2226_v36 = vpop.f32.mrb[28].mxu0 }
 0xebb   : > { %v2227_v27 = vadd.f32 %v2750_v35, %v2226_v36  ;;  %v2919_v28 = vpop.f32.mrb[29].mxu0 }
 0xebc   : > { %v2229_v29 = vpop.f32.mrb[30].mxu0 }
 0xebd   : > { %v2232_v30 = vmax.f32 %v2227_v27, 0.0  ;;  %v2920_v31 = vpop.f32.mrb[31].mxu0 }
 0xebf   : > { %v2233_v32 = vpack.c.bf16 %v2232_v30, %v2232_v30 }
 0xec1   : > { %2930 = vmatmul.mubr.msk.bf16.vlgmr.msra.gmra.mrb[28].mxu1 %vm2273_vm12, %v2233_v32 }
 0xf94   : > { %v2311_v33 = vpop.f32.mrb[28].mxu1 }
 0xf95   : > { %v2312_v34 = vadd.f32 %v2754_v2, %v2311_v33  ;;  %v2931_v38 = vpop.f32.mrb[29].mxu1 }
 0xf96   : > { %v2314_v39 = vpop.f32.mrb[30].mxu1 }
 0xf97   : > { %v2932_v40 = vpop.f32.mrb[31].mxu1  ;;  %v2317_v5 = vadd.f32 %v2312_v34, %v2164_v24 }
 0xf99   : > { %v2318_v41 = vsel %vm1250_vm2, %v2317_v5, 0.0 }
 0xf9a   : > { %2319 = vadd.xlane.f32.xlu0 %v2318_v41 }
0x1027   : > { %v2320_v42 = vpop.xlane.xlu0 %2319 }
0x1028   : > { %v2321_v43 = vmul.f32 0.03125, %v2320_v42 }
0x102a   : > { %v2322_v44 = vsub.f32 %v2317_v5, %v2321_v43 }
0x102c   : > { %v2323_v45 = vmul.f32 %v2322_v44, %v2322_v44 }
0x102e   : > { %v2324_v46 = vsel %vm1250_vm2, %v2323_v45, 0.0 }
0x102f   : > { %2325 = vadd.xlane.f32.xlu0 %v2324_v46 }
0x10bc   : > { %v2326_v47 = vpop.xlane.xlu0 %2325 }
0x10bd   : > { %v2327_v48 = vmul.f32 0.03125, %v2326_v47 }
0x10bf   : > { %v2328_v49 = vadd.f32 1e-06, %v2327_v48 }
0x10c1   : > { %3048 = vrsqrt.f32 %v2328_v49 }
0x10cb   : > { %v3049_v50 = vpop.eup %3048 }
0x10cc   : > { %v2330_v53 = vmul.f32 %v3049_v50, %v2322_v44  ;;  %2351 = sbr.rel (%p2762_p1) target bundleno = 4307 (0x10d3), region = 132 }
0x10ce   : > { %v2338_v55 = vmul.f32 %v2760_v52, %v2330_v53 }
0x10d0   : > { %v2346_v56 = vadd.f32 %v2761_v54, %v2338_v55 }
0x10d2   : > { %2347 = vst.msk [vmem:[#allocation2] sm:$0xff] %vm1250_vm2, %v2346_v56  ;;  %2352 = vst.msk [vmem:[%s1103_s24] sm:$0xff] (!%p2762_p1), %vm1250_vm2, %v2346_v56 }
0x10d3 PF: > { %s3923_s25 = sld [smem:[#allocation10_spill]]  ;;  %s3924_s12 = sld [smem:[#allocation7_spill]] }
0x10d4   : > { %s3926_s19 = sld [smem:[#allocation47_spill]]  ;;  %s2367_s21 = sshll.u32 %s1103_s24, 4  ;;  %s2368_s21 = int_to_ptr.vmem [resolvable:$true] %s2367_s21 }
0x10d5   : > { %s3050_s8 = scalar_lea.vmem %s2368_s21, 128  ;;  %s3152_s14 = smov [#allocation3]  }
0x10d6   : > { %p3051_p2 = scmp.ne.s32.totalorder %s2368_s21, %s3050_s8  ;;  %s3054_s5 = sshll.u32 %s3152_s14, 4  ;;  %s3055_s5 = int_to_ptr.vmem [resolvable:$false] %s3054_s5 }
0x10d7   : > { %s3056_s23 = scalar_lea.vmem %s3055_s5, 256  ;;  %p3057_p6 = scmp.lt.s32.totalorder %s2368_s21, %s3055_s5 }
0x10d8   : > { %p3052_p4 = pnand %p3051_p2, %p3337_p3  ;;  %p3058_p7 = scmp.lt.s32.totalorder %s3056_s23, %s3050_s8 }
0x10d9   : > { %s2764_s9 = sshll.u32 %s3923_s25, 7  ;;  %s3927_s3 = sand.u32 1, %s3924_s12  }
0x10da   : > { %s3726_s30 = scalar_lea.hbm %s3926_s19, %s2764_s9  ;;  %s2354_s28 = scalar_lea.sflag [#allocation4], %s3927_s3 }
0x10db   : > { %p3053_p5 = pneg %p3052_p4  ;;  %p3059_p8 = por %p3058_p7, %p3057_p6 }
0x10dd   : > { %p3060_p10 = pnand %p3059_p8, %p3053_p5 }
0x10df   : > { %3063 = shalt.err (!%p3060_p10)
}
0x10e0   : > { %s3064_s4 = scalar_lea.hbm %s3726_s30, 128  ;;  %s3068_s6 = scalar_lea.hbm %s3926_s19, 256 }
0x10e1   : > { %p3065_p11 = scmp.ne.s32.totalorder %s3726_s30, %s3064_s4  ;;  %p3069_p0 = scmp.lt.u32.totalorder %s3726_s30, %s3926_s19 }
0x10e2   : > { %p3070_p1 = scmp.lt.u32.totalorder %s3068_s6, %s3064_s4  ;;  %p3072_p4 = scmp.lt.u32.totalorder %s3064_s4, %s3726_s30 }
0x10e3   : > { %p3066_p12 = pnand %p3065_p11, %p3337_p3 }
0x10e4   : > { %p3071_p2 = por %p3070_p1, %p3069_p0 }
0x10e5   : > { %p3067_p13 = pneg %p3066_p12 }
0x10e6   : > { %p3073_p5 = por %p3072_p4, %p3071_p2 }
0x10e8   : > { %p3074_p6 = pnand %p3073_p5, %p3067_p13 }
0x10ea   : > { %3077 = shalt.err (!%p3074_p6)
}
0x10eb   : > { %2933 = dma.vmem_to_hbm [thread:$0]  (%p3337_p3), %s2368_s21, 128, %s3726_s30, %s2354_s28  }
0x10ec PF: > { %s3928_s16 = sld [smem:[#allocation13_spill]]  ;;  %s3929_s17 = sld [smem:[#allocation6_spill]] }
0x10f2   : > { %p2939_p7 = scmp.ge.s32.totalorder %s3928_s16, 2  ;;  %s2379_s10 = sand.u32 1, %s3929_s17  }
0x10f3   : > { %s2380_s27 = scalar_lea.sflag [#allocation4], %s2379_s10 }
0x10f4   : > { %p2936_p8 = pnand %p2939_p7, %p3347_p9 }
0x10f6   : > { %3111 = dma.done.wait (!%p2936_p8), %s2380_s27, 128  }
0x10f7   : > { %3113 = vsyncadd (!%p2936_p8), %s2380_s27, 4294967168  ;;  %s39_s0 = sadd.s32 1, %s3928_s16   ;;  %s3931_s27 = sld [smem:[#allocation7_spill]] }
0x10f8   : > { %p36_p10 = scmp.ge.s32.totalorder %s39_s0, 6   ;;  %s3932_s3 = sld [smem:[#allocation8_spill]] }
0x10f9   : > { %s3933_s7 = sld [smem:[#allocation18_spill]]  ;;  %s3934_s28 = sld [smem:[#allocation11_spill]] }
0x10fa   : > { %s3935_s8 = sld [smem:[#allocation12_spill]]  ;;  %s3936_s4 = sld [smem:[#allocation14_spill]] }
0x10fb   : > { %s3937_s29 = sld [smem:[#allocation16_spill]]  ;;  %38 = sbr.rel (!%p36_p10) target bundleno = 30 (0x1e), region = 242 }
0x1102   :  { %2385 = vsyncpa [#allocation4], 1 }
0x1103   :  { %2387 = vsyncpa [#allocation4 + $0x1], 1 }

</bundles_post_ra>
